<compile_context>
chip_gen: v7x
topology: tpu7x:2x2x1
jax: 0.10.0
libtpu: 0.0.40
codegen_flags: <defaults>
</compile_context>

<pallas_src>
import functools

import jax
import jax.numpy as jnp
from jax.experimental import pallas as pl
from jax.experimental.pallas import tpu as pltpu


# ----------------------------------------------------------------------------
# Fused kernel: GRU recurrence + mean over time + item/user fusion + Linear
# + softmax, all in one invocation (grid=(1,)).
# ----------------------------------------------------------------------------
def _srl_fused_kernel(x_ref, w_ih_ref, w_hh_ref, b_fold_ref,
                      item_ref, user_ref, w_out_ref, b_out_ref,
                      out_ref, *, seq_len, hp):
    P = hp  # lane-padded hidden width (multiple of 128, lane P-1 is the "1" lane)

    # One bf16 MXU matmul for ALL timesteps' input-side gate pre-activations.
    # b_fold already holds b_ih (all gates) + b_hh (r, z gates) and the +30
    # z-gate bias that pins the constant-one lane.  Kept entirely in vregs.
    xpre = (jnp.dot(x_ref[...], w_ih_ref[...],
                    preferred_element_type=jnp.float32)
            + b_fold_ref[...])                                 # (S, 3P) f32

    w_hh = w_hh_ref[...]                                       # (P, 3P) bf16

    # h0: zeros in real lanes, 1.0 in lane P-1 (drives the folded b_hn).
    lane = jax.lax.broadcasted_iota(jnp.int32, (1, P), 1)
    h = (lane == P - 1).astype(jnp.float32)                    # (1, P)
    h_sum = jnp.zeros((1, P), jnp.float32)

    # Fully-unrolled serial recurrence (seq_len is small and static).
    # For long sequences switch to lax.fori_loop with a capped unroll.
    for t in range(seq_len):
        xt = xpre[t:t + 1, :]                                  # (1, 3P) static slice
        hh = jnp.dot(h.astype(jnp.bfloat16), w_hh,
                     preferred_element_type=jnp.float32)       # (1, 3P)
        rz = jax.nn.sigmoid(xt[:, :2 * P] + hh[:, :2 * P])     # fused r,z gates
        r = rz[:, :P]
        z = rz[:, P:]
        # b_hn is already inside hh (constant-one lane of h * row P-1 of w_hh).
        n = jnp.tanh(xt[:, 2 * P:] + r * hh[:, 2 * P:])
        h = (1.0 - z) * n + z * h                              # PyTorch GRU rule
        h_sum = h_sum + h

    mean_h = h_sum * (1.0 / float(seq_len))                    # (1, P)

    # Head epilogue (padded lanes of item/user/w_out are zero, so the
    # constant-one lane and the other pad lanes contribute nothing).
    combined = item_ref[...] * mean_h                          # (1, P)
    mul = user_ref[...] * combined                             # (U, P)
    logits = (jnp.dot(mul, w_out_ref[...],
                      preferred_element_type=jnp.float32)
              + b_out_ref[...])                                # (U, R)
    m = jnp.max(logits, axis=-1, keepdims=True)
    e = jnp.exp(logits - m)
    out_ref[...] = e / jnp.sum(e, axis=-1, keepdims=True)      # exact softmax


# ----------------------------------------------------------------------------
# Parameter repack: stack (r, z, n) gates along lanes, zero-pad hidden/emb to
# P lanes, fold biases, embed b_hn into the constant-one row of w_hh.
# (One-time repack per call here; in production it is done once.)
# ----------------------------------------------------------------------------
def _pack_params(params, P):
    w_ih = params["w_ih"]                    # (3, E, H), pre-transposed for x @ W
    w_hh = params["w_hh"]                    # (3, H, H)
    E = w_ih.shape[1]
    H = w_hh.shape[-1]
    b_ih = params["b_ih"].reshape(3, H)
    b_hh = params["b_hh"].reshape(3, H)
    ONE = P - 1                              # constant-one lane index (>= H)

    w_ih_p = jnp.zeros((P, 3 * P), jnp.float32)
    w_hh_p = jnp.zeros((P, 3 * P), jnp.float32)
    for g in range(3):
        w_ih_p = w_ih_p.at[:E, g * P:g * P + H].set(w_ih[g])
        w_hh_p = w_hh_p.at[:H, g * P:g * P + H].set(w_hh[g])
    # Fold b_hn (b_hh of the n gate) into the constant-one row of w_hh.
    w_hh_p = w_hh_p.at[ONE, 2 * P:2 * P + H].set(b_hh[2])

    # b_fold: b_ih + b_hh for r,z; b_ih only for n (b_hn lives inside
    # r * (h @ W_hn + b_hn) and is handled via the constant-one lane).
    # +30 on the z gate of lane ONE makes sigmoid == 1.0 there, so the
    # constant-one lane of h stays exactly 1 across all timesteps.
    b_fold = jnp.zeros((1, 3 * P), jnp.float32)
    b_fold = b_fold.at[0, 0:H].set(b_ih[0] + b_hh[0])
    b_fold = b_fold.at[0, P:P + H].set(b_ih[1] + b_hh[1])
    b_fold = b_fold.at[0, 2 * P:2 * P + H].set(b_ih[2])
    b_fold = b_fold.at[0, P + ONE].set(30.0)

    return (w_ih_p.astype(jnp.bfloat16),
            w_hh_p.astype(jnp.bfloat16),
            b_fold)


# ----------------------------------------------------------------------------
# Wrapper matching SRL_Encoder.forward(item_id, user_ids, word_embeddings)
# ----------------------------------------------------------------------------
def srl_encoder_forward(params, item_id, user_ids, word_embeddings):
    seq_len, batch, emb_dim = word_embeddings.shape
    hidden = params["w_hh"].shape[-1]
    rating_range = params["w_out"].shape[-1]
    # The module's `gru_out.view(1, emb_dim)` requires these; fail loudly.
    assert batch == 1, "SRL_Encoder requires batch == 1"
    assert hidden == emb_dim, "SRL_Encoder requires hidden_dim == emb_dim"

    # Lane-aligned padded width with at least one spare (constant-one) lane.
    P = (hidden // 128 + 1) * 128

    w_ih_p, w_hh_p, b_fold = _pack_params(params, P)

    x = word_embeddings.reshape(seq_len, emb_dim).astype(jnp.bfloat16)
    x_p = jnp.zeros((seq_len, P), jnp.bfloat16).at[:, :emb_dim].set(x)

    # TODO(synk): nn.Embedding index lookups (tiny gathers) stay as plain-JAX
    # glue in the wrapper rather than in-kernel DMA gathers.
    item_emb = params["item_table"][item_id][None, :]            # (1, E)
    user_emb = params["user_table"][jnp.asarray(user_ids)]       # (U, E)
    num_users = user_emb.shape[0]

    item_p = jnp.zeros((1, P), jnp.float32).at[:, :emb_dim].set(item_emb)
    user_p = jnp.zeros((num_users, P), jnp.float32).at[:, :emb_dim].set(user_emb)
    w_out_p = jnp.zeros((P, rating_range), jnp.float32).at[:hidden, :].set(
        params["w_out"])
    b_out = params["b_out"].reshape(1, rating_range)

    kernel = functools.partial(_srl_fused_kernel, seq_len=seq_len, hp=P)
    return pl.pallas_call(
        kernel,
        out_shape=jax.ShapeDtypeStruct((num_users, rating_range), jnp.float32),
        grid=(1,),
        in_specs=[
            pl.BlockSpec((seq_len, P), lambda i: (0, 0)),            # x_p
            pl.BlockSpec((P, 3 * P), lambda i: (0, 0)),              # w_ih_p
            pl.BlockSpec((P, 3 * P), lambda i: (0, 0)),              # w_hh_p
            pl.BlockSpec((1, 3 * P), lambda i: (0, 0)),              # b_fold
            pl.BlockSpec((1, P), lambda i: (0, 0)),                  # item_p
            pl.BlockSpec((num_users, P), lambda i: (0, 0)),          # user_p
            pl.BlockSpec((P, rating_range), lambda i: (0, 0)),       # w_out_p
            pl.BlockSpec((1, rating_range), lambda i: (0, 0)),       # b_out
        ],
        out_specs=pl.BlockSpec((num_users, rating_range), lambda i: (0, 0)),
        compiler_params=pltpu.CompilerParams(
            dimension_semantics=("arbitrary",)),
    )(x_p, w_ih_p, w_hh_p, b_fold, item_p, user_p, w_out_p, b_out)


# ----------------------------------------------------------------------------
# Pure-JAX f32 reference for correctness check
# ----------------------------------------------------------------------------
def reference_forward(params, item_id, user_ids, word_embeddings):
    w_ih, w_hh = params["w_ih"], params["w_hh"]
    b_ih, b_hh = params["b_ih"], params["b_hh"]
    hidden = w_hh.shape[-1]

    def step(h, x):  # x: (1, E)
        i_r = x @ w_ih[0] + b_ih[0]
        i_z = x @ w_ih[1] + b_ih[1]
        i_n = x @ w_ih[2] + b_ih[2]
        h_r = h @ w_hh[0] + b_hh[0]
        h_z = h @ w_hh[1] + b_hh[1]
        h_n = h @ w_hh[2] + b_hh[2]
        r = jax.nn.sigmoid(i_r + h_r)
        z = jax.nn.sigmoid(i_z + h_z)
        n = jnp.tanh(i_n + r * h_n)
        h_new = (1.0 - z) * n + z * h
        return h_new, h_new

    h0 = jnp.zeros((1, hidden), jnp.float32)
    _, hs = jax.lax.scan(step, h0, word_embeddings)      # (seq, 1, H)
    mean_h = jnp.mean(hs, axis=0)                        # (1, H)
    item_emb = params["item_table"][item_id][None, :]
    user_emb = params["user_table"][jnp.asarray(user_ids)]
    combined = item_emb * mean_h
    mul = user_emb * combined
    logits = mul @ params["w_out"] + params["b_out"]
    return jax.nn.softmax(logits, axis=-1)


if __name__ == "__main__":
    # Small shapes consistent with the module: hidden_dim == emb_dim required.
    emb_dim = 32
    hidden_dim = 32
    seq_len = 8
    item_num = 10
    user_num = 12
    rating_range = 5

    key = jax.random.PRNGKey(0)
    ks = jax.random.split(key, 8)
    params = {
        "item_table": 0.1 * jax.random.normal(ks[0], (item_num, emb_dim), jnp.float32),
        "user_table": 0.1 * jax.random.normal(ks[1], (user_num, emb_dim), jnp.float32),
        # GRU weights stacked (r, z, n), pre-transposed for x @ W.
        "w_ih": 0.1 * jax.random.normal(ks[2], (3, emb_dim, hidden_dim), jnp.float32),
        "w_hh": 0.1 * jax.random.normal(ks[3], (3, hidden_dim, hidden_dim), jnp.float32),
        "b_ih": 0.1 * jax.random.normal(ks[4], (3, 1, hidden_dim), jnp.float32),
        "b_hh": 0.1 * jax.random.normal(ks[5], (3, 1, hidden_dim), jnp.float32),
        # hidden2rating Linear, stored as (hidden, rating_range) for x @ W.
        "w_out": 0.1 * jax.random.normal(ks[6], (hidden_dim, rating_range), jnp.float32),
        "b_out": 0.1 * jax.random.normal(ks[7], (1, rating_range), jnp.float32),
    }

    item_id = 3
    user_ids = [0, 5, 7, 11]                      # U = 4 users
    word_embeddings = jax.random.normal(
        jax.random.PRNGKey(42), (seq_len, 1, emb_dim), jnp.float32)

    scores = srl_encoder_forward(params, item_id, user_ids, word_embeddings)
    scores = jax.block_until_ready(scores)

    ref = reference_forward(params, item_id, user_ids, word_embeddings)
    assert scores.shape == (len(user_ids), rating_range)
    # Exact softmax division -> rows sum to 1 up to f32 rounding.
    assert jnp.allclose(jnp.sum(scores, axis=-1), 1.0, atol=1e-4)
    # bf16 MXU operands with f32 accumulation; errors are far below 2e-3.
    assert jnp.allclose(scores, ref, atol=2e-3, rtol=2e-3)

    print("KERNEL_OK")
</pallas_src>

<mosaic_0001>
module attributes {stable_mosaic.version = 11 : i64} {
  func.func @_srl_fused_kernel(%arg0: i32, %arg1: memref<8x128xbf16, #tpu.memory_space<vmem>>, %arg2: memref<128x384xbf16, #tpu.memory_space<vmem>>, %arg3: memref<128x384xbf16, #tpu.memory_space<vmem>>, %arg4: memref<1x384xf32, #tpu.memory_space<vmem>>, %arg5: memref<1x128xf32, #tpu.memory_space<vmem>>, %arg6: memref<4x128xf32, #tpu.memory_space<vmem>>, %arg7: memref<128x5xf32, #tpu.memory_space<vmem>>, %arg8: memref<1x5xf32, #tpu.memory_space<vmem>>, %arg9: memref<4x5xf32, #tpu.memory_space<vmem>>) attributes {dimension_semantics = [#tpu.dimension_semantics<arbitrary>], iteration_bounds = array<i64: 1>, scalar_prefetch = 0 : i64, scratch_operands = 0 : i64, tpu.core_type = #tpu.core_type<tc>, window_params = [{pipeline_mode = #tpu.pipeline_mode<synchronous>, transform_indices = @transform_0, window_bounds = array<i64: 8, 128>}, {pipeline_mode = #tpu.pipeline_mode<synchronous>, transform_indices = @transform_1, window_bounds = array<i64: 128, 384>}, {pipeline_mode = #tpu.pipeline_mode<synchronous>, transform_indices = @transform_2, window_bounds = array<i64: 128, 384>}, {pipeline_mode = #tpu.pipeline_mode<synchronous>, transform_indices = @transform_3, window_bounds = array<i64: 1, 384>}, {pipeline_mode = #tpu.pipeline_mode<synchronous>, transform_indices = @transform_4, window_bounds = array<i64: 1, 128>}, {pipeline_mode = #tpu.pipeline_mode<synchronous>, transform_indices = @transform_5, window_bounds = array<i64: 4, 128>}, {pipeline_mode = #tpu.pipeline_mode<synchronous>, transform_indices = @transform_6, window_bounds = array<i64: 128, 5>}, {pipeline_mode = #tpu.pipeline_mode<synchronous>, transform_indices = @transform_7, window_bounds = array<i64: 1, 5>}, {pipeline_mode = #tpu.pipeline_mode<synchronous>, transform_indices = @transform_8, window_bounds = array<i64: 4, 5>}]} {
    %c0 = arith.constant 0 : index
    %c0_0 = arith.constant 0 : index
    %0 = vector.load %arg1[%c0, %c0_0] : memref<8x128xbf16, #tpu.memory_space<vmem>>, vector<8x128xbf16>
    %c0_1 = arith.constant 0 : index
    %c0_2 = arith.constant 0 : index
    %1 = vector.load %arg2[%c0_1, %c0_2] : memref<128x384xbf16, #tpu.memory_space<vmem>>, vector<128x384xbf16>
    %cst = arith.constant dense<0.000000e+00> : vector<8x384xf32>
    %2 = tpu.matmul %0, %1, %cst {dimension_numbers = #tpu.dot_dimension_numbers<[1], [0], [0], [1], [0, 0, 1, 1], [], []>} : vector<8x128xbf16>, vector<128x384xbf16>, vector<8x384xf32> -> vector<8x384xf32>
    %c0_3 = arith.constant 0 : index
    %c0_4 = arith.constant 0 : index
    %3 = vector.load %arg4[%c0_3, %c0_4] : memref<1x384xf32, #tpu.memory_space<vmem>>, vector<1x384xf32>
    %4 = vector.broadcast %3 : vector<1x384xf32> to vector<8x384xf32>
    %5 = arith.addf %2, %4 : vector<8x384xf32>
    %c0_5 = arith.constant 0 : index
    %c0_6 = arith.constant 0 : index
    %6 = vector.load %arg3[%c0_5, %c0_6] : memref<128x384xbf16, #tpu.memory_space<vmem>>, vector<128x384xbf16>
    %7 = tpu.iota {dimensions = array<i32: 1>} : vector<1x128xi32>
    %c127_i32 = arith.constant 127 : i32
    %8 = vector.broadcast %c127_i32 : i32 to vector<1x128xi32>
    %9 = arith.cmpi eq, %7, %8 : vector<1x128xi32>
    %10 = arith.extui %9 : vector<1x128xi1> to vector<1x128xi32>
    %11 = arith.sitofp %10 : vector<1x128xi32> to vector<1x128xf32>
    %cst_7 = arith.constant 0.000000e+00 : f32
    %12 = vector.broadcast %cst_7 : f32 to vector<1x128xf32>
    %13 = vector.extract_strided_slice %5 {offsets = [0, 0], sizes = [1, 384], strides = [1, 1]} : vector<8x384xf32> to vector<1x384xf32>
    %14 = arith.truncf %11 : vector<1x128xf32> to vector<1x128xbf16>
    %cst_8 = arith.constant dense<0.000000e+00> : vector<1x384xf32>
    %15 = tpu.matmul %14, %6, %cst_8 {dimension_numbers = #tpu.dot_dimension_numbers<[1], [0], [0], [1], [0, 0, 1, 1], [], []>} : vector<1x128xbf16>, vector<128x384xbf16>, vector<1x384xf32> -> vector<1x384xf32>
    %16 = vector.extract_strided_slice %13 {offsets = [0, 0], sizes = [1, 256], strides = [1, 1]} : vector<1x384xf32> to vector<1x256xf32>
    %17 = vector.extract_strided_slice %15 {offsets = [0, 0], sizes = [1, 256], strides = [1, 1]} : vector<1x384xf32> to vector<1x256xf32>
    %18 = arith.addf %16, %17 : vector<1x256xf32>
    %19 = arith.negf %18 : vector<1x256xf32>
    %20 = math.exp %19 : vector<1x256xf32>
    %cst_9 = arith.constant 1.000000e+00 : f32
    %21 = vector.broadcast %cst_9 : f32 to vector<1x256xf32>
    %22 = arith.addf %21, %20 : vector<1x256xf32>
    %23 = arith.divf %21, %22 : vector<1x256xf32>
    %24 = vector.extract_strided_slice %23 {offsets = [0, 0], sizes = [1, 128], strides = [1, 1]} : vector<1x256xf32> to vector<1x128xf32>
    %25 = vector.extract_strided_slice %23 {offsets = [0, 128], sizes = [1, 128], strides = [1, 1]} : vector<1x256xf32> to vector<1x128xf32>
    %26 = vector.extract_strided_slice %13 {offsets = [0, 256], sizes = [1, 128], strides = [1, 1]} : vector<1x384xf32> to vector<1x128xf32>
    %27 = vector.extract_strided_slice %15 {offsets = [0, 256], sizes = [1, 128], strides = [1, 1]} : vector<1x384xf32> to vector<1x128xf32>
    %28 = arith.mulf %24, %27 : vector<1x128xf32>
    %29 = arith.addf %26, %28 : vector<1x128xf32>
    %30 = math.tanh %29 : vector<1x128xf32>
    %cst_10 = arith.constant 1.000000e+00 : f32
    %31 = vector.broadcast %cst_10 : f32 to vector<1x128xf32>
    %32 = arith.subf %31, %25 : vector<1x128xf32>
    %33 = arith.mulf %32, %30 : vector<1x128xf32>
    %34 = arith.mulf %25, %11 : vector<1x128xf32>
    %35 = arith.addf %33, %34 : vector<1x128xf32>
    %36 = arith.addf %12, %35 : vector<1x128xf32>
    %37 = vector.extract_strided_slice %5 {offsets = [1, 0], sizes = [1, 384], strides = [1, 1]} : vector<8x384xf32> to vector<1x384xf32>
    %38 = arith.truncf %35 : vector<1x128xf32> to vector<1x128xbf16>
    %cst_11 = arith.constant dense<0.000000e+00> : vector<1x384xf32>
    %39 = tpu.matmul %38, %6, %cst_11 {dimension_numbers = #tpu.dot_dimension_numbers<[1], [0], [0], [1], [0, 0, 1, 1], [], []>} : vector<1x128xbf16>, vector<128x384xbf16>, vector<1x384xf32> -> vector<1x384xf32>
    %40 = vector.extract_strided_slice %37 {offsets = [0, 0], sizes = [1, 256], strides = [1, 1]} : vector<1x384xf32> to vector<1x256xf32>
    %41 = vector.extract_strided_slice %39 {offsets = [0, 0], sizes = [1, 256], strides = [1, 1]} : vector<1x384xf32> to vector<1x256xf32>
    %42 = arith.addf %40, %41 : vector<1x256xf32>
    %43 = arith.negf %42 : vector<1x256xf32>
    %44 = math.exp %43 : vector<1x256xf32>
    %cst_12 = arith.constant 1.000000e+00 : f32
    %45 = vector.broadcast %cst_12 : f32 to vector<1x256xf32>
    %46 = arith.addf %45, %44 : vector<1x256xf32>
    %47 = arith.divf %45, %46 : vector<1x256xf32>
    %48 = vector.extract_strided_slice %47 {offsets = [0, 0], sizes = [1, 128], strides = [1, 1]} : vector<1x256xf32> to vector<1x128xf32>
    %49 = vector.extract_strided_slice %47 {offsets = [0, 128], sizes = [1, 128], strides = [1, 1]} : vector<1x256xf32> to vector<1x128xf32>
    %50 = vector.extract_strided_slice %37 {offsets = [0, 256], sizes = [1, 128], strides = [1, 1]} : vector<1x384xf32> to vector<1x128xf32>
    %51 = vector.extract_strided_slice %39 {offsets = [0, 256], sizes = [1, 128], strides = [1, 1]} : vector<1x384xf32> to vector<1x128xf32>
    %52 = arith.mulf %48, %51 : vector<1x128xf32>
    %53 = arith.addf %50, %52 : vector<1x128xf32>
    %54 = math.tanh %53 : vector<1x128xf32>
    %cst_13 = arith.constant 1.000000e+00 : f32
    %55 = vector.broadcast %cst_13 : f32 to vector<1x128xf32>
    %56 = arith.subf %55, %49 : vector<1x128xf32>
    %57 = arith.mulf %56, %54 : vector<1x128xf32>
    %58 = arith.mulf %49, %35 : vector<1x128xf32>
    %59 = arith.addf %57, %58 : vector<1x128xf32>
    %60 = arith.addf %36, %59 : vector<1x128xf32>
    %61 = vector.extract_strided_slice %5 {offsets = [2, 0], sizes = [1, 384], strides = [1, 1]} : vector<8x384xf32> to vector<1x384xf32>
    %62 = arith.truncf %59 : vector<1x128xf32> to vector<1x128xbf16>
    %cst_14 = arith.constant dense<0.000000e+00> : vector<1x384xf32>
    %63 = tpu.matmul %62, %6, %cst_14 {dimension_numbers = #tpu.dot_dimension_numbers<[1], [0], [0], [1], [0, 0, 1, 1], [], []>} : vector<1x128xbf16>, vector<128x384xbf16>, vector<1x384xf32> -> vector<1x384xf32>
    %64 = vector.extract_strided_slice %61 {offsets = [0, 0], sizes = [1, 256], strides = [1, 1]} : vector<1x384xf32> to vector<1x256xf32>
    %65 = vector.extract_strided_slice %63 {offsets = [0, 0], sizes = [1, 256], strides = [1, 1]} : vector<1x384xf32> to vector<1x256xf32>
    %66 = arith.addf %64, %65 : vector<1x256xf32>
    %67 = arith.negf %66 : vector<1x256xf32>
    %68 = math.exp %67 : vector<1x256xf32>
    %cst_15 = arith.constant 1.000000e+00 : f32
    %69 = vector.broadcast %cst_15 : f32 to vector<1x256xf32>
    %70 = arith.addf %69, %68 : vector<1x256xf32>
    %71 = arith.divf %69, %70 : vector<1x256xf32>
    %72 = vector.extract_strided_slice %71 {offsets = [0, 0], sizes = [1, 128], strides = [1, 1]} : vector<1x256xf32> to vector<1x128xf32>
    %73 = vector.extract_strided_slice %71 {offsets = [0, 128], sizes = [1, 128], strides = [1, 1]} : vector<1x256xf32> to vector<1x128xf32>
    %74 = vector.extract_strided_slice %61 {offsets = [0, 256], sizes = [1, 128], strides = [1, 1]} : vector<1x384xf32> to vector<1x128xf32>
    %75 = vector.extract_strided_slice %63 {offsets = [0, 256], sizes = [1, 128], strides = [1, 1]} : vector<1x384xf32> to vector<1x128xf32>
    %76 = arith.mulf %72, %75 : vector<1x128xf32>
    %77 = arith.addf %74, %76 : vector<1x128xf32>
    %78 = math.tanh %77 : vector<1x128xf32>
    %cst_16 = arith.constant 1.000000e+00 : f32
    %79 = vector.broadcast %cst_16 : f32 to vector<1x128xf32>
    %80 = arith.subf %79, %73 : vector<1x128xf32>
    %81 = arith.mulf %80, %78 : vector<1x128xf32>
    %82 = arith.mulf %73, %59 : vector<1x128xf32>
    %83 = arith.addf %81, %82 : vector<1x128xf32>
    %84 = arith.addf %60, %83 : vector<1x128xf32>
    %85 = vector.extract_strided_slice %5 {offsets = [3, 0], sizes = [1, 384], strides = [1, 1]} : vector<8x384xf32> to vector<1x384xf32>
    %86 = arith.truncf %83 : vector<1x128xf32> to vector<1x128xbf16>
    %cst_17 = arith.constant dense<0.000000e+00> : vector<1x384xf32>
    %87 = tpu.matmul %86, %6, %cst_17 {dimension_numbers = #tpu.dot_dimension_numbers<[1], [0], [0], [1], [0, 0, 1, 1], [], []>} : vector<1x128xbf16>, vector<128x384xbf16>, vector<1x384xf32> -> vector<1x384xf32>
    %88 = vector.extract_strided_slice %85 {offsets = [0, 0], sizes = [1, 256], strides = [1, 1]} : vector<1x384xf32> to vector<1x256xf32>
    %89 = vector.extract_strided_slice %87 {offsets = [0, 0], sizes = [1, 256], strides = [1, 1]} : vector<1x384xf32> to vector<1x256xf32>
    %90 = arith.addf %88, %89 : vector<1x256xf32>
    %91 = arith.negf %90 : vector<1x256xf32>
    %92 = math.exp %91 : vector<1x256xf32>
    %cst_18 = arith.constant 1.000000e+00 : f32
    %93 = vector.broadcast %cst_18 : f32 to vector<1x256xf32>
    %94 = arith.addf %93, %92 : vector<1x256xf32>
    %95 = arith.divf %93, %94 : vector<1x256xf32>
    %96 = vector.extract_strided_slice %95 {offsets = [0, 0], sizes = [1, 128], strides = [1, 1]} : vector<1x256xf32> to vector<1x128xf32>
    %97 = vector.extract_strided_slice %95 {offsets = [0, 128], sizes = [1, 128], strides = [1, 1]} : vector<1x256xf32> to vector<1x128xf32>
    %98 = vector.extract_strided_slice %85 {offsets = [0, 256], sizes = [1, 128], strides = [1, 1]} : vector<1x384xf32> to vector<1x128xf32>
    %99 = vector.extract_strided_slice %87 {offsets = [0, 256], sizes = [1, 128], strides = [1, 1]} : vector<1x384xf32> to vector<1x128xf32>
    %100 = arith.mulf %96, %99 : vector<1x128xf32>
    %101 = arith.addf %98, %100 : vector<1x128xf32>
    %102 = math.tanh %101 : vector<1x128xf32>
    %cst_19 = arith.constant 1.000000e+00 : f32
    %103 = vector.broadcast %cst_19 : f32 to vector<1x128xf32>
    %104 = arith.subf %103, %97 : vector<1x128xf32>
    %105 = arith.mulf %104, %102 : vector<1x128xf32>
    %106 = arith.mulf %97, %83 : vector<1x128xf32>
    %107 = arith.addf %105, %106 : vector<1x128xf32>
    %108 = arith.addf %84, %107 : vector<1x128xf32>
    %109 = vector.extract_strided_slice %5 {offsets = [4, 0], sizes = [1, 384], strides = [1, 1]} : vector<8x384xf32> to vector<1x384xf32>
    %110 = arith.truncf %107 : vector<1x128xf32> to vector<1x128xbf16>
    %cst_20 = arith.constant dense<0.000000e+00> : vector<1x384xf32>
    %111 = tpu.matmul %110, %6, %cst_20 {dimension_numbers = #tpu.dot_dimension_numbers<[1], [0], [0], [1], [0, 0, 1, 1], [], []>} : vector<1x128xbf16>, vector<128x384xbf16>, vector<1x384xf32> -> vector<1x384xf32>
    %112 = vector.extract_strided_slice %109 {offsets = [0, 0], sizes = [1, 256], strides = [1, 1]} : vector<1x384xf32> to vector<1x256xf32>
    %113 = vector.extract_strided_slice %111 {offsets = [0, 0], sizes = [1, 256], strides = [1, 1]} : vector<1x384xf32> to vector<1x256xf32>
    %114 = arith.addf %112, %113 : vector<1x256xf32>
    %115 = arith.negf %114 : vector<1x256xf32>
    %116 = math.exp %115 : vector<1x256xf32>
    %cst_21 = arith.constant 1.000000e+00 : f32
    %117 = vector.broadcast %cst_21 : f32 to vector<1x256xf32>
    %118 = arith.addf %117, %116 : vector<1x256xf32>
    %119 = arith.divf %117, %118 : vector<1x256xf32>
    %120 = vector.extract_strided_slice %119 {offsets = [0, 0], sizes = [1, 128], strides = [1, 1]} : vector<1x256xf32> to vector<1x128xf32>
    %121 = vector.extract_strided_slice %119 {offsets = [0, 128], sizes = [1, 128], strides = [1, 1]} : vector<1x256xf32> to vector<1x128xf32>
    %122 = vector.extract_strided_slice %109 {offsets = [0, 256], sizes = [1, 128], strides = [1, 1]} : vector<1x384xf32> to vector<1x128xf32>
    %123 = vector.extract_strided_slice %111 {offsets = [0, 256], sizes = [1, 128], strides = [1, 1]} : vector<1x384xf32> to vector<1x128xf32>
    %124 = arith.mulf %120, %123 : vector<1x128xf32>
    %125 = arith.addf %122, %124 : vector<1x128xf32>
    %126 = math.tanh %125 : vector<1x128xf32>
    %cst_22 = arith.constant 1.000000e+00 : f32
    %127 = vector.broadcast %cst_22 : f32 to vector<1x128xf32>
    %128 = arith.subf %127, %121 : vector<1x128xf32>
    %129 = arith.mulf %128, %126 : vector<1x128xf32>
    %130 = arith.mulf %121, %107 : vector<1x128xf32>
    %131 = arith.addf %129, %130 : vector<1x128xf32>
    %132 = arith.addf %108, %131 : vector<1x128xf32>
    %133 = vector.extract_strided_slice %5 {offsets = [5, 0], sizes = [1, 384], strides = [1, 1]} : vector<8x384xf32> to vector<1x384xf32>
    %134 = arith.truncf %131 : vector<1x128xf32> to vector<1x128xbf16>
    %cst_23 = arith.constant dense<0.000000e+00> : vector<1x384xf32>
    %135 = tpu.matmul %134, %6, %cst_23 {dimension_numbers = #tpu.dot_dimension_numbers<[1], [0], [0], [1], [0, 0, 1, 1], [], []>} : vector<1x128xbf16>, vector<128x384xbf16>, vector<1x384xf32> -> vector<1x384xf32>
    %136 = vector.extract_strided_slice %133 {offsets = [0, 0], sizes = [1, 256], strides = [1, 1]} : vector<1x384xf32> to vector<1x256xf32>
    %137 = vector.extract_strided_slice %135 {offsets = [0, 0], sizes = [1, 256], strides = [1, 1]} : vector<1x384xf32> to vector<1x256xf32>
    %138 = arith.addf %136, %137 : vector<1x256xf32>
    %139 = arith.negf %138 : vector<1x256xf32>
    %140 = math.exp %139 : vector<1x256xf32>
    %cst_24 = arith.constant 1.000000e+00 : f32
    %141 = vector.broadcast %cst_24 : f32 to vector<1x256xf32>
    %142 = arith.addf %141, %140 : vector<1x256xf32>
    %143 = arith.divf %141, %142 : vector<1x256xf32>
    %144 = vector.extract_strided_slice %143 {offsets = [0, 0], sizes = [1, 128], strides = [1, 1]} : vector<1x256xf32> to vector<1x128xf32>
    %145 = vector.extract_strided_slice %143 {offsets = [0, 128], sizes = [1, 128], strides = [1, 1]} : vector<1x256xf32> to vector<1x128xf32>
    %146 = vector.extract_strided_slice %133 {offsets = [0, 256], sizes = [1, 128], strides = [1, 1]} : vector<1x384xf32> to vector<1x128xf32>
    %147 = vector.extract_strided_slice %135 {offsets = [0, 256], sizes = [1, 128], strides = [1, 1]} : vector<1x384xf32> to vector<1x128xf32>
    %148 = arith.mulf %144, %147 : vector<1x128xf32>
    %149 = arith.addf %146, %148 : vector<1x128xf32>
    %150 = math.tanh %149 : vector<1x128xf32>
    %cst_25 = arith.constant 1.000000e+00 : f32
    %151 = vector.broadcast %cst_25 : f32 to vector<1x128xf32>
    %152 = arith.subf %151, %145 : vector<1x128xf32>
    %153 = arith.mulf %152, %150 : vector<1x128xf32>
    %154 = arith.mulf %145, %131 : vector<1x128xf32>
    %155 = arith.addf %153, %154 : vector<1x128xf32>
    %156 = arith.addf %132, %155 : vector<1x128xf32>
    %157 = vector.extract_strided_slice %5 {offsets = [6, 0], sizes = [1, 384], strides = [1, 1]} : vector<8x384xf32> to vector<1x384xf32>
    %158 = arith.truncf %155 : vector<1x128xf32> to vector<1x128xbf16>
    %cst_26 = arith.constant dense<0.000000e+00> : vector<1x384xf32>
    %159 = tpu.matmul %158, %6, %cst_26 {dimension_numbers = #tpu.dot_dimension_numbers<[1], [0], [0], [1], [0, 0, 1, 1], [], []>} : vector<1x128xbf16>, vector<128x384xbf16>, vector<1x384xf32> -> vector<1x384xf32>
    %160 = vector.extract_strided_slice %157 {offsets = [0, 0], sizes = [1, 256], strides = [1, 1]} : vector<1x384xf32> to vector<1x256xf32>
    %161 = vector.extract_strided_slice %159 {offsets = [0, 0], sizes = [1, 256], strides = [1, 1]} : vector<1x384xf32> to vector<1x256xf32>
    %162 = arith.addf %160, %161 : vector<1x256xf32>
    %163 = arith.negf %162 : vector<1x256xf32>
    %164 = math.exp %163 : vector<1x256xf32>
    %cst_27 = arith.constant 1.000000e+00 : f32
    %165 = vector.broadcast %cst_27 : f32 to vector<1x256xf32>
    %166 = arith.addf %165, %164 : vector<1x256xf32>
    %167 = arith.divf %165, %166 : vector<1x256xf32>
    %168 = vector.extract_strided_slice %167 {offsets = [0, 0], sizes = [1, 128], strides = [1, 1]} : vector<1x256xf32> to vector<1x128xf32>
    %169 = vector.extract_strided_slice %167 {offsets = [0, 128], sizes = [1, 128], strides = [1, 1]} : vector<1x256xf32> to vector<1x128xf32>
    %170 = vector.extract_strided_slice %157 {offsets = [0, 256], sizes = [1, 128], strides = [1, 1]} : vector<1x384xf32> to vector<1x128xf32>
    %171 = vector.extract_strided_slice %159 {offsets = [0, 256], sizes = [1, 128], strides = [1, 1]} : vector<1x384xf32> to vector<1x128xf32>
    %172 = arith.mulf %168, %171 : vector<1x128xf32>
    %173 = arith.addf %170, %172 : vector<1x128xf32>
    %174 = math.tanh %173 : vector<1x128xf32>
    %cst_28 = arith.constant 1.000000e+00 : f32
    %175 = vector.broadcast %cst_28 : f32 to vector<1x128xf32>
    %176 = arith.subf %175, %169 : vector<1x128xf32>
    %177 = arith.mulf %176, %174 : vector<1x128xf32>
    %178 = arith.mulf %169, %155 : vector<1x128xf32>
    %179 = arith.addf %177, %178 : vector<1x128xf32>
    %180 = arith.addf %156, %179 : vector<1x128xf32>
    %181 = vector.extract_strided_slice %5 {offsets = [7, 0], sizes = [1, 384], strides = [1, 1]} : vector<8x384xf32> to vector<1x384xf32>
    %182 = arith.truncf %179 : vector<1x128xf32> to vector<1x128xbf16>
    %cst_29 = arith.constant dense<0.000000e+00> : vector<1x384xf32>
    %183 = tpu.matmul %182, %6, %cst_29 {dimension_numbers = #tpu.dot_dimension_numbers<[1], [0], [0], [1], [0, 0, 1, 1], [], []>} : vector<1x128xbf16>, vector<128x384xbf16>, vector<1x384xf32> -> vector<1x384xf32>
    %184 = vector.extract_strided_slice %181 {offsets = [0, 0], sizes = [1, 256], strides = [1, 1]} : vector<1x384xf32> to vector<1x256xf32>
    %185 = vector.extract_strided_slice %183 {offsets = [0, 0], sizes = [1, 256], strides = [1, 1]} : vector<1x384xf32> to vector<1x256xf32>
    %186 = arith.addf %184, %185 : vector<1x256xf32>
    %187 = arith.negf %186 : vector<1x256xf32>
    %188 = math.exp %187 : vector<1x256xf32>
    %cst_30 = arith.constant 1.000000e+00 : f32
    %189 = vector.broadcast %cst_30 : f32 to vector<1x256xf32>
    %190 = arith.addf %189, %188 : vector<1x256xf32>
    %191 = arith.divf %189, %190 : vector<1x256xf32>
    %192 = vector.extract_strided_slice %191 {offsets = [0, 0], sizes = [1, 128], strides = [1, 1]} : vector<1x256xf32> to vector<1x128xf32>
    %193 = vector.extract_strided_slice %191 {offsets = [0, 128], sizes = [1, 128], strides = [1, 1]} : vector<1x256xf32> to vector<1x128xf32>
    %194 = vector.extract_strided_slice %181 {offsets = [0, 256], sizes = [1, 128], strides = [1, 1]} : vector<1x384xf32> to vector<1x128xf32>
    %195 = vector.extract_strided_slice %183 {offsets = [0, 256], sizes = [1, 128], strides = [1, 1]} : vector<1x384xf32> to vector<1x128xf32>
    %196 = arith.mulf %192, %195 : vector<1x128xf32>
    %197 = arith.addf %194, %196 : vector<1x128xf32>
    %198 = math.tanh %197 : vector<1x128xf32>
    %cst_31 = arith.constant 1.000000e+00 : f32
    %199 = vector.broadcast %cst_31 : f32 to vector<1x128xf32>
    %200 = arith.subf %199, %193 : vector<1x128xf32>
    %201 = arith.mulf %200, %198 : vector<1x128xf32>
    %202 = arith.mulf %193, %179 : vector<1x128xf32>
    %203 = arith.addf %201, %202 : vector<1x128xf32>
    %204 = arith.addf %180, %203 : vector<1x128xf32>
    %cst_32 = arith.constant 1.250000e-01 : f32
    %205 = vector.broadcast %cst_32 : f32 to vector<1x128xf32>
    %206 = arith.mulf %204, %205 : vector<1x128xf32>
    %c0_33 = arith.constant 0 : index
    %c0_34 = arith.constant 0 : index
    %207 = vector.load %arg5[%c0_33, %c0_34] : memref<1x128xf32, #tpu.memory_space<vmem>>, vector<1x128xf32>
    %208 = arith.mulf %207, %206 : vector<1x128xf32>
    %c0_35 = arith.constant 0 : index
    %c0_36 = arith.constant 0 : index
    %209 = vector.load %arg6[%c0_35, %c0_36] : memref<4x128xf32, #tpu.memory_space<vmem>>, vector<4x128xf32>
    %210 = vector.broadcast %208 : vector<1x128xf32> to vector<4x128xf32>
    %211 = arith.mulf %209, %210 : vector<4x128xf32>
    %c0_37 = arith.constant 0 : index
    %c0_38 = arith.constant 0 : index
    %212 = vector.load %arg7[%c0_37, %c0_38] : memref<128x5xf32, #tpu.memory_space<vmem>>, vector<128x5xf32>
    %cst_39 = arith.constant dense<0.000000e+00> : vector<4x5xf32>
    %213 = tpu.matmul %211, %212, %cst_39 {dimension_numbers = #tpu.dot_dimension_numbers<[1], [0], [0], [1], [0, 0, 1, 1], [], []>} : vector<4x128xf32>, vector<128x5xf32>, vector<4x5xf32> -> vector<4x5xf32>
    %c0_40 = arith.constant 0 : index
    %c0_41 = arith.constant 0 : index
    %214 = vector.load %arg8[%c0_40, %c0_41] : memref<1x5xf32, #tpu.memory_space<vmem>>, vector<1x5xf32>
    %215 = vector.broadcast %214 : vector<1x5xf32> to vector<4x5xf32>
    %216 = arith.addf %213, %215 : vector<4x5xf32>
    %cst_42 = arith.constant dense<0xFF800000> : vector<4xf32>
    %217 = vector.multi_reduction <maximumf>, %216, %cst_42 [1] : vector<4x5xf32> to vector<4xf32>
    %218 = vector.shape_cast %217 : vector<4xf32> to vector<4x1xf32>
    %219 = vector.broadcast %218 : vector<4x1xf32> to vector<4x5xf32>
    %220 = arith.subf %216, %219 : vector<4x5xf32>
    %221 = math.exp %220 : vector<4x5xf32>
    %cst_43 = arith.constant dense<0.000000e+00> : vector<4xf32>
    %222 = vector.multi_reduction <add>, %221, %cst_43 [1] : vector<4x5xf32> to vector<4xf32>
    %223 = vector.shape_cast %222 : vector<4xf32> to vector<4x1xf32>
    %224 = vector.broadcast %223 : vector<4x1xf32> to vector<4x5xf32>
    %225 = arith.divf %221, %224 : vector<4x5xf32>
    %c0_44 = arith.constant 0 : index
    %c0_45 = arith.constant 0 : index
    %226 = vector.load %arg9[%c0_44, %c0_45] : memref<4x5xf32, #tpu.memory_space<vmem>>, vector<4x5xf32>
    tpu.vector_store %arg9[%c0_44, %c0_45], %225 {strides = array<i32>} : memref<4x5xf32, #tpu.memory_space<vmem>>, vector<4x5xf32>,
    return
  }
  func.func @transform_0(%arg0: i32) -> (i32, i32) {
    %c0_i32 = arith.constant 0 : i32
    %c0_i32_0 = arith.constant 0 : i32
    %c0_i32_1 = arith.constant 0 : i32
    return %c0_i32, %c0_i32_0 : i32, i32
  }
  func.func @transform_1(%arg0: i32) -> (i32, i32) {
    %c0_i32 = arith.constant 0 : i32
    %c0_i32_0 = arith.constant 0 : i32
    %c0_i32_1 = arith.constant 0 : i32
    return %c0_i32, %c0_i32_0 : i32, i32
  }
  func.func @transform_2(%arg0: i32) -> (i32, i32) {
    %c0_i32 = arith.constant 0 : i32
    %c0_i32_0 = arith.constant 0 : i32
    %c0_i32_1 = arith.constant 0 : i32
    return %c0_i32, %c0_i32_0 : i32, i32
  }
  func.func @transform_3(%arg0: i32) -> (i32, i32) {
    %c0_i32 = arith.constant 0 : i32
    %c0_i32_0 = arith.constant 0 : i32
    %c0_i32_1 = arith.constant 0 : i32
    return %c0_i32, %c0_i32_0 : i32, i32
  }
  func.func @transform_4(%arg0: i32) -> (i32, i32) {
    %c0_i32 = arith.constant 0 : i32
    %c0_i32_0 = arith.constant 0 : i32
    %c0_i32_1 = arith.constant 0 : i32
    return %c0_i32, %c0_i32_0 : i32, i32
  }
  func.func @transform_5(%arg0: i32) -> (i32, i32) {
    %c0_i32 = arith.constant 0 : i32
    %c0_i32_0 = arith.constant 0 : i32
    %c0_i32_1 = arith.constant 0 : i32
    return %c0_i32, %c0_i32_0 : i32, i32
  }
  func.func @transform_6(%arg0: i32) -> (i32, i32) {
    %c0_i32 = arith.constant 0 : i32
    %c0_i32_0 = arith.constant 0 : i32
    %c0_i32_1 = arith.constant 0 : i32
    return %c0_i32, %c0_i32_0 : i32, i32
  }
  func.func @transform_7(%arg0: i32) -> (i32, i32) {
    %c0_i32 = arith.constant 0 : i32
    %c0_i32_0 = arith.constant 0 : i32
    %c0_i32_1 = arith.constant 0 : i32
    return %c0_i32, %c0_i32_0 : i32, i32
  }
  func.func @transform_8(%arg0: i32) -> (i32, i32) {
    %c0_i32 = arith.constant 0 : i32
    %c0_i32_0 = arith.constant 0 : i32
    %c0_i32_1 = arith.constant 0 : i32
    return %c0_i32, %c0_i32_0 : i32, i32
  }
}

</mosaic_0001>

<bundles_post_ra>
// kernel: tpu_custom_call.1
= control target key start
LH: loop header
LB: loop body
LE: loop exit
PB: predicated region body
PF: predicated region fallthrough
CT: control target
= control target key end

     0   :  { %13 = vsyncpa [#allocation3], 0  ;;  %s2820_s0 = inlined_call_operand.vmem [shape: bf16[8,128], index: 0, kind: input, shape index: {}]   ;;  %s2821_s1 = inlined_call_operand.hbm [shape: bf16[128,384], index: 1, kind: input, shape index: {}]   ;;  %s2822_s2 = inlined_call_operand.hbm [shape: bf16[128,384], index: 2, kind: input, shape index: {}]   ;;  %s2823_s3 = inlined_call_operand.vmem [shape: f32[1,384], index: 3, kind: input, shape index: {}]   ;;  %s2824_s4 = inlined_call_operand.vmem [shape: f32[1,128], index: 4, kind: input, shape index: {}]   ;;  %s2825_s5 = inlined_call_operand.vmem [shape: f32[4,128], index: 5, kind: input, shape index: {}]   ;;  %s2826_s6 = inlined_call_operand.vmem [shape: f32[128,5], index: 6, kind: input, shape index: {}]   ;;  %s2827_s7 = inlined_call_operand.vmem [shape: f32[1,5], index: 7, kind: input, shape index: {}]   ;;  %s2828_s8 = inlined_call_operand.hbm [shape: f32[4,5], index: 8, kind: output, shape index: {}]  }
   0x1   :  { %14 = vsyncpa [#allocation6], 0 }
   0x2   :  { %15 = vsyncpa [#allocation4], 0  ;;  %s2224_s27 = smov [#allocation2]   ;;  %s2152_s9 = scalar_lea.hbm %s2821_s1, 3072 }
   0x3   :  { %s23_s28 = sshll.u32 %s2224_s27, 4  ;;  %p2153_p0 = scmp.ne.s32.totalorder %s2821_s1, %s2152_s9  ;;  %s24_s28 = int_to_ptr.vmem [resolvable:$true] %s23_s28 }
   0x4   :  { %p2156_p1 = scmp.lt.u32.totalorder %s2152_s9, %s2821_s1 }
   0x6   :  { %p2158_p2 = pnand %p2156_p1, %p2153_p0 }
   0x8   :  { %2161 = shalt.err (!%p2158_p2)
}
   0x9   :  { %s2162_s14 = scalar_lea.vmem %s24_s28, 3072  ;;  %p2167_p4 = scmp.lt.s32.totalorder %s24_s28, %s24_s28 }
   0xa   :  { %p2163_p3 = scmp.ne.s32.totalorder %s24_s28, %s2162_s14  ;;  %p2168_p5 = scmp.lt.s32.totalorder %s2162_s14, %s2162_s14 }
   0xc   :  { %p2169_p6 = por %p2168_p5, %p2167_p4 }
   0xe   :  { %p2170_p7 = pnand %p2169_p6, %p2163_p3 }
  0x10   :  { %2173 = shalt.err (!%p2170_p7)
}
  0x11   :  { %s2225_s15 = smov 192   ;;  %s2226_s16 = smov 12  }
  0x12   :  { %29 = dma.hbm_to_vmem [thread:$0]  %s2821_s1, 3072, %s24_s28, [#allocation3], %s2225_s15, %s2225_s15, %s2226_s16  }
  0x13   :  { %s2227_s19 = smov [#allocation5]   ;;  %s2174_s23 = scalar_lea.hbm %s2822_s2, 3072 }
  0x14   :  { %s35_s20 = sshll.u32 %s2227_s19, 4  ;;  %p2175_p8 = scmp.ne.s32.totalorder %s2822_s2, %s2174_s23  ;;  %s36_s20 = int_to_ptr.vmem [resolvable:$true] %s35_s20 }
  0x15   :  { %p2178_p9 = scmp.lt.u32.totalorder %s2174_s23, %s2822_s2 }
  0x17   :  { %p2180_p10 = pnand %p2178_p9, %p2175_p8 }
  0x19   :  { %2183 = shalt.err (!%p2180_p10)
}
  0x1a   :  { %s2184_s29 = scalar_lea.vmem %s36_s20, 3072  ;;  %p2189_p12 = scmp.lt.s32.totalorder %s36_s20, %s36_s20 }
  0x1b   :  { %p2185_p11 = scmp.ne.s32.totalorder %s36_s20, %s2184_s29  ;;  %p2190_p13 = scmp.lt.s32.totalorder %s2184_s29, %s2184_s29 }
  0x1d   :  { %p2191_p0 = por %p2190_p13, %p2189_p12 }
  0x1f   :  { %p2192_p1 = pnand %p2191_p0, %p2185_p11 }
  0x21   :  { %2195 = shalt.err (!%p2192_p1)
}
  0x22   :  { %41 = dma.hbm_to_vmem [thread:$0]  %s2822_s2, 3072, %s36_s20, [#allocation6], %s2225_s15, %s2225_s15, %s2226_s16  }
  0x23   :  { %2218 = dma.done.wait [#allocation3], 3072  }
  0x24   :  { %2219 = vsyncadd [#allocation3], 4294964224 }
  0x25   :  { %2220 = dma.done.wait [#allocation6], 3072  }
  0x26   :  { %2221 = vsyncadd [#allocation6], 4294964224  ;;  %v2228_v0 = vmov 0.0   ;;  %v2229_v1 = vmov 0   ;;  %vm2230_vm0 = vmmov 0   ;;  %v94_v43 = vlaneseq }
  0x27   :  { %1738 = vmatprep.subr.bf16.mxu1 %v2228_v0  ;;  %269 = vmatprep.mubr.bf16.mxu0 %v2229_v1  ;;  %v1987_v2 = vld [vmem:[#allocation2 + $0x4] ss:$12 sps:$4 sm:$0xff]   ;;  %v1989_v3 = vld [vmem:[#allocation2] ss:$12 sps:$4 sm:$0xff]   ;;  %v1990_v4 = vld [vmem:[#allocation2 + $0x1c] ss:$12 sps:$4 sm:$0xff]  }
  0x28   :  { %1754 = vmatprep.mubr.msk.bf16.mxu1 %vm2230_vm0, %v2228_v0  ;;  %237 = vmatprep.subr.bf16.mxu0 %v1987_v2  ;;  %v1992_v5 = vld [vmem:[#allocation2 + $0x18] ss:$12 sps:$4 sm:$0xff]   ;;  %v1993_v6 = vld [vmem:[#allocation2 + $0x34] ss:$12 sps:$4 sm:$0xff]   ;;  %v1995_v7 = vld [vmem:[#allocation2 + $0x30] ss:$12 sps:$4 sm:$0xff]  }
  0x29   :  { %238 = vmatpush1.bf16.msra.mxu0 %v1989_v3  ;;  %v1996_v8 = vld [vmem:[#allocation2 + $0x4c] ss:$12 sps:$4 sm:$0xff]   ;;  %v2008_v9 = vld [vmem:[#allocation2 + $0x8] ss:$12 sps:$4 sm:$0xff]   ;;  %v1999_v11 = vld [vmem:[#allocation2 + $0x64] ss:$12 sps:$4 sm:$0xff]  }
  0x2a   :  { %239 = vmatprep.subr.bf16.mxu0 %v1990_v4  ;;  %v1998_v10 = vld [vmem:[#allocation2 + $0x48] ss:$12 sps:$4 sm:$0xff]   ;;  %1739 = vmatpush3.bf16.msra.mxu1 %v2008_v9  ;;  %v2012_v12 = vld [vmem:[#allocation2 + $0x20] ss:$12 sps:$4 sm:$0xff]   ;;  %v2016_v15 = vld [vmem:[#allocation2 + $0x38] ss:$12 sps:$4 sm:$0xff]  }
  0x2b   :  { %1740 = vmatprep.subr.bf16.mxu1 %v2228_v0  ;;  %v2001_v13 = vld [vmem:[#allocation2 + $0x60] ss:$12 sps:$4 sm:$0xff]   ;;  %v2002_v14 = vld [vmem:[#allocation2 + $0x7c] ss:$12 sps:$4 sm:$0xff]   ;;  %v2004_v16 = vld [vmem:[#allocation2 + $0x78] ss:$12 sps:$4 sm:$0xff]  }
  0x2c   :  { %v2005_v17 = vld [vmem:[#allocation2 + $0x94] ss:$12 sps:$4 sm:$0xff]   ;;  %v2020_v18 = vld [vmem:[#allocation2 + $0x50] ss:$12 sps:$4 sm:$0xff]   ;;  %v2009_v20 = vld [vmem:[#allocation2 + $0xac] ss:$12 sps:$4 sm:$0xff]  }
  0x2d   :  { %240 = vmatpush1.bf16.msra.mxu0 %v1992_v5  ;;  %v2007_v19 = vld [vmem:[#allocation2 + $0x90] ss:$12 sps:$4 sm:$0xff]   ;;  %v2024_v21 = vld [vmem:[#allocation2 + $0x68] ss:$12 sps:$4 sm:$0xff]   ;;  %v2028_v24 = vld [vmem:[#allocation2 + $0x80] ss:$12 sps:$4 sm:$0xff]  }
  0x2e   :  { %241 = vmatprep.subr.bf16.mxu0 %v1993_v6  ;;  %1741 = vmatpush3.bf16.msra.mxu1 %v2012_v12  ;;  %v2011_v22 = vld [vmem:[#allocation2 + $0xa8] ss:$12 sps:$4 sm:$0xff]   ;;  %v2311_v23 = vld [vmem:[#allocation5 + $0x4] ss:$12 sps:$4 sm:$0xff]   ;;  %v59_v25 = vld [vmem:[%s2820_s0] sm:$0xf] }
  0x2f   :  { %1742 = vmatprep.subr.bf16.mxu1 %v2228_v0  ;;  %v2317_v26 = vld [vmem:[#allocation5] ss:$12 sps:$4 sm:$0xff]   ;;  %v2319_v27 = vld [vmem:[#allocation5 + $0x1c] ss:$12 sps:$4 sm:$0xff]   ;;  %v2032_v28 = vld [vmem:[#allocation2 + $0x98] ss:$12 sps:$4 sm:$0xff]  }
  0x30   :  { %v2323_v29 = vld [vmem:[#allocation5 + $0x18] ss:$12 sps:$4 sm:$0xff]   ;;  %v2326_v30 = vld [vmem:[#allocation5 + $0x34] ss:$12 sps:$4 sm:$0xff]   ;;  %v2036_v31 = vld [vmem:[#allocation2 + $0xb0] ss:$12 sps:$4 sm:$0xff]  }
  0x31   :  { %242 = vmatpush1.bf16.msra.mxu0 %v1995_v7  ;;  %v2332_v32 = vld [vmem:[#allocation5 + $0x30] ss:$12 sps:$4 sm:$0xff]   ;;  %v2335_v33 = vld [vmem:[#allocation5 + $0x4c] ss:$12 sps:$4 sm:$0xff]   ;;  %v2337_v34 = vld [vmem:[#allocation5 + $0x8] ss:$12 sps:$4 sm:$0xff]  }
  0x32   :  { %243 = vmatprep.subr.bf16.mxu0 %v1996_v8  ;;  %1743 = vmatpush3.bf16.msra.mxu1 %v2016_v15  ;;  %v2341_v35 = vld [vmem:[#allocation5 + $0x48] ss:$12 sps:$4 sm:$0xff]   ;;  %v2344_v36 = vld [vmem:[#allocation5 + $0x64] ss:$12 sps:$4 sm:$0xff]   ;;  %v2347_v37 = vld [vmem:[#allocation5 + $0x20] ss:$12 sps:$4 sm:$0xff]  }
  0x33   :  { %1744 = vmatprep.subr.bf16.mxu1 %v2228_v0  ;;  %v2353_v38 = vld [vmem:[#allocation5 + $0x60] ss:$12 sps:$4 sm:$0xff]   ;;  %v2356_v39 = vld [vmem:[#allocation5 + $0x7c] ss:$12 sps:$4 sm:$0xff]   ;;  %v2359_v40 = vld [vmem:[#allocation5 + $0x38] ss:$12 sps:$4 sm:$0xff]  }
  0x34   :  { %v2363_v41 = vld [vmem:[#allocation5 + $0x78] ss:$12 sps:$4 sm:$0xff]   ;;  %v2366_v42 = vld [vmem:[#allocation5 + $0x94] ss:$12 sps:$4 sm:$0xff]   ;;  %v2369_v44 = vld [vmem:[#allocation5 + $0x50] ss:$12 sps:$4 sm:$0xff]  }
  0x35   :  { %244 = vmatpush1.bf16.msra.mxu0 %v1998_v10  ;;  %v2373_v45 = vld [vmem:[#allocation5 + $0x90] ss:$12 sps:$4 sm:$0xff]   ;;  %v2376_v46 = vld [vmem:[#allocation5 + $0xac] ss:$12 sps:$4 sm:$0xff]   ;;  %v2379_v47 = vand.u32 127, %v94_v43  ;;  %v2453_v55 = vshrl.u32 %v94_v43, 7 }
  0x36   :  { %245 = vmatprep.subr.bf16.mxu0 %v1999_v11  ;;  %1745 = vmatpush3.bf16.msra.mxu1 %v2020_v18  ;;  %v2382_v48 = vld [vmem:[#allocation5 + $0x68] ss:$12 sps:$4 sm:$0xff]   ;;  %v2391_v50 = vld [vmem:[#allocation5 + $0x80] ss:$12 sps:$4 sm:$0xff]   ;;  %v2403_v52 = vld [vmem:[#allocation5 + $0x98] ss:$12 sps:$4 sm:$0xff]  }
  0x37   :  { %1746 = vmatprep.subr.bf16.mxu1 %v2228_v0  ;;  %v2386_v49 = vld [vmem:[#allocation5 + $0xa8] ss:$12 sps:$4 sm:$0xff]   ;;  %vm352_vm1 = vcmp.eq.s32.totalorder %v2379_v47, 127  ;;  %v2231_v53 = vmov 1.0|1.0   ;;  %v100_v56 = vsub.s32 1, %v2453_v55 }
  0x38   :  { %vm2398_vm2 = vmpackc.low %vm352_vm1, %vm352_vm1  ;;  %v2412_v54 = vld [vmem:[#allocation5 + $0xb0] ss:$12 sps:$4 sm:$0xff]   ;;  %v92_v57 = vld [vmem:[%s2823_s3] sm:$0x7]  ;;  %v104_v63 = vsub.s32 2, %v2453_v55  ;;  %v96_v9 = vsub.s32 0, %v2453_v55 }
  0x39   :  { %246 = vmatpush1.bf16.msra.mxu0 %v2001_v13  ;;  %v101_v58 = vrot.slane %v92_v57, %v100_v56  ;;  %v1594_v51 = vsel %vm352_vm1, 1.0, %v2228_v0  ;;  %vm1541_vm3 = vcmask 35840  }
  0x3a   :  { %247 = vmatprep.subr.bf16.mxu0 %v2002_v14  ;;  %1747 = vmatpush3.bf16.msra.mxu1 %v2024_v21  ;;  %v105_v3 = vrot.slane %v92_v57, %v104_v63  ;;  %v97_v10 = vrot.slane %v92_v57, %v96_v9 }
  0x3b   :  { %1748 = vmatprep.subr.bf16.mxu1 %v2228_v0 }
  0x3d   :  { %248 = vmatpush1.bf16.msra.mxu0 %v2004_v16 }
  0x3e   :  { %249 = vmatprep.subr.bf16.mxu0 %v2005_v17  ;;  %1749 = vmatpush3.bf16.msra.mxu1 %v2028_v24 }
  0x3f   :  { %1750 = vmatprep.subr.bf16.mxu1 %v2228_v0 }
  0x41   :  { %250 = vmatpush1.bf16.msra.mxu0 %v2007_v19 }
  0x42   :  { %251 = vmatprep.subr.bf16.mxu0 %v2009_v20  ;;  %1751 = vmatpush3.bf16.msra.mxu1 %v2032_v28 }
  0x43   :  { %1752 = vmatprep.subr.bf16.mxu1 %v2228_v0 }
  0x45   :  { %252 = vmatpush1.bf16.msra.mxu0 %v2011_v22 }
  0x46   :  { %484 = vmatprep.subr.bf16.mxu0 %v2311_v23  ;;  %1753 = vmatpush3.bf16.msra.mxu1 %v2036_v31 }
  0x47   :  { %1758 = vmatprep.subr.bf16.mxu1 %v2228_v0 }
  0x48   :  { %270 = vmatmul.mubr.bf16.vlgmr.msra.gmra.mrb[0].mxu0 %v59_v25 }
  0x49   :  { %485 = vmatpush1.bf16.msra.mxu0 %v2317_v26  ;;  %516 = vmatprep.mubr.bf16.mxu0 %v2229_v1 }
  0x4a   :  { %486 = vmatprep.subr.bf16.mxu0 %v2319_v27  ;;  %1755 = vmatmul.mubr.bf16.vlgmr.msra.gmra.mrb[0].mxu1 %v59_v25 }
  0x4b   :  { %1759 = vmatpush3.bf16.msra.mxu1 %v2337_v34  ;;  %1774 = vmatprep.mubr.msk.bf16.mxu1 %vm2230_vm0, %v2228_v0 }
  0x4c   :  { %1760 = vmatprep.subr.bf16.mxu1 %v2228_v0 }
  0x4d   :  { %487 = vmatpush1.bf16.msra.mxu0 %v2323_v29 }
  0x4e   :  { %488 = vmatprep.subr.bf16.mxu0 %v2326_v30 }
  0x4f   :  { %1761 = vmatpush3.bf16.msra.mxu1 %v2347_v37 }
  0x50   :  { %1762 = vmatprep.subr.bf16.mxu1 %v2228_v0 }
  0x51   :  { %489 = vmatpush1.bf16.msra.mxu0 %v2332_v32 }
  0x52   :  { %490 = vmatprep.subr.bf16.mxu0 %v2335_v33 }
  0x53   :  { %1763 = vmatpush3.bf16.msra.mxu1 %v2359_v40 }
  0x54   :  { %1764 = vmatprep.subr.bf16.mxu1 %v2228_v0 }
  0x55   :  { %491 = vmatpush1.bf16.msra.mxu0 %v2341_v35 }
  0x56   :  { %492 = vmatprep.subr.bf16.mxu0 %v2344_v36 }
  0x57   :  { %1765 = vmatpush3.bf16.msra.mxu1 %v2369_v44 }
  0x58   :  { %1766 = vmatprep.subr.bf16.mxu1 %v2228_v0 }
  0x59   :  { %493 = vmatpush1.bf16.msra.mxu0 %v2353_v38 }
  0x5a   :  { %494 = vmatprep.subr.bf16.mxu0 %v2356_v39 }
  0x5b   :  { %1767 = vmatpush3.bf16.msra.mxu1 %v2382_v48 }
  0x5c   :  { %1768 = vmatprep.subr.bf16.mxu1 %v2228_v0 }
  0x5d   :  { %495 = vmatpush1.bf16.msra.mxu0 %v2363_v41 }
  0x5e   :  { %496 = vmatprep.subr.bf16.mxu0 %v2366_v42 }
  0x5f   :  { %1769 = vmatpush3.bf16.msra.mxu1 %v2391_v50 }
  0x60   :  { %1770 = vmatprep.subr.bf16.mxu1 %v2228_v0 }
  0x61   :  { %497 = vmatpush1.bf16.msra.mxu0 %v2373_v45 }
  0x62   :  { %498 = vmatprep.subr.bf16.mxu0 %v2376_v46 }
  0x63   :  { %1771 = vmatpush3.bf16.msra.mxu1 %v2403_v52 }
  0x64   :  { %1772 = vmatprep.subr.bf16.mxu1 %v2228_v0 }
  0x65   :  { %499 = vmatpush1.bf16.msra.mxu0 %v2386_v49 }
  0x66   :  { %588 = vmatprep.subr.bf16.mxu0 %v2311_v23 }
  0x67   :  { %1773 = vmatpush3.bf16.msra.mxu1 %v2412_v54 }
  0x68   :  { %1620 = vmatmul.mubr.msk.bf16.vlgmr.msra.gmra.mrb[4].mxu0 %vm2398_vm2, %v2231_v53  ;;  %1778 = vmatprep.subr.bf16.mxu1 %v2228_v0 }
  0x69   :  { %589 = vmatpush1.bf16.msra.mxu0 %v2317_v26  ;;  %620 = vmatprep.mubr.bf16.mxu0 %v2229_v1 }
  0x6a   :  { %590 = vmatprep.subr.bf16.mxu0 %v2319_v27  ;;  %1775 = vmatmul.mubr.msk.bf16.vlgmr.msra.gmra.mrb[4].mxu1 %vm2398_vm2, %v2231_v53 }
  0x6b   :  { %1779 = vmatpush3.bf16.msra.mxu1 %v2337_v34  ;;  %1794 = vmatprep.mubr.msk.bf16.mxu1 %vm2230_vm0, %v2228_v0 }
  0x6c   :  { %1780 = vmatprep.subr.bf16.mxu1 %v2228_v0 }
  0x6d   :  { %591 = vmatpush1.bf16.msra.mxu0 %v2323_v29 }
  0x6e   :  { %592 = vmatprep.subr.bf16.mxu0 %v2326_v30 }
  0x6f   :  { %1781 = vmatpush3.bf16.msra.mxu1 %v2347_v37 }
  0x70   :  { %1782 = vmatprep.subr.bf16.mxu1 %v2228_v0 }
  0x71   :  { %593 = vmatpush1.bf16.msra.mxu0 %v2332_v32 }
  0x72   :  { %594 = vmatprep.subr.bf16.mxu0 %v2335_v33 }
  0x73   :  { %1783 = vmatpush3.bf16.msra.mxu1 %v2359_v40 }
  0x74   :  { %1784 = vmatprep.subr.bf16.mxu1 %v2228_v0 }
  0x75   :  { %595 = vmatpush1.bf16.msra.mxu0 %v2341_v35 }
  0x76   :  { %596 = vmatprep.subr.bf16.mxu0 %v2344_v36 }
  0x77   :  { %1785 = vmatpush3.bf16.msra.mxu1 %v2369_v44 }
  0x78   :  { %1786 = vmatprep.subr.bf16.mxu1 %v2228_v0 }
  0x79   :  { %597 = vmatpush1.bf16.msra.mxu0 %v2353_v38 }
  0x7a   :  { %598 = vmatprep.subr.bf16.mxu0 %v2356_v39 }
  0x7b   :  { %1787 = vmatpush3.bf16.msra.mxu1 %v2382_v48 }
  0x7c   :  { %1788 = vmatprep.subr.bf16.mxu1 %v2228_v0 }
  0x7d   :  { %599 = vmatpush1.bf16.msra.mxu0 %v2363_v41 }
  0x7e   :  { %600 = vmatprep.subr.bf16.mxu0 %v2366_v42 }
  0x7f   :  { %1789 = vmatpush3.bf16.msra.mxu1 %v2391_v50 }
  0x80   :  { %1790 = vmatprep.subr.bf16.mxu1 %v2228_v0 }
  0x81   :  { %601 = vmatpush1.bf16.msra.mxu0 %v2373_v45 }
  0x82   :  { %602 = vmatprep.subr.bf16.mxu0 %v2376_v46 }
  0x83   :  { %1791 = vmatpush3.bf16.msra.mxu1 %v2403_v52 }
  0x84   :  { %1792 = vmatprep.subr.bf16.mxu1 %v2228_v0 }
  0x85   :  { %603 = vmatpush1.bf16.msra.mxu0 %v2386_v49 }
  0x86   :  { %711 = vmatprep.subr.bf16.mxu0 %v2311_v23 }
  0x87   :  { %1793 = vmatpush3.bf16.msra.mxu1 %v2412_v54 }
  0x88   :  { %1798 = vmatprep.subr.bf16.mxu1 %v2228_v0 }
 0x11b   :  { %v271_v59 = vpop.f32.mrb[0].mxu0 }
 0x11c   :  { %v273_v60 = vpop.f32.mrb[1].mxu0  ;;  %v2467_v11 = vadd.f32 %v271_v59, %v97_v10 }
 0x11d   :  { %v2459_v61 = vadd.f32 %v273_v60, %v101_v58  ;;  %v275_v62 = vpop.f32.mrb[2].mxu0  ;;  %v312_v4 = vpop.f32.mrb[0].mxu1 }
 0x11e   :  { %v276_v2 = vpop.f32.mrb[3].mxu0  ;;  %v2462_v5 = vadd.f32 %v312_v4, %v105_v3  ;;  %v1756_v6 = vpop.f32.mrb[1].mxu1 }
 0x11f   :  { %v315_v7 = vpop.f32.mrb[2].mxu1 }
 0x120   :  { %v1757_v8 = vpop.f32.mrb[3].mxu1 }
 0x13b   :  { %v518_v12 = vpop.f32.mrb[4].mxu0 }
 0x13c   :  { %v565_v13 = vadd.f32 %v518_v12, %v2467_v11  ;;  %v520_v14 = vpop.f32.mrb[5].mxu0 }
 0x13d   :  { %v566_v15 = vadd.f32 %v520_v14, %v2459_v61  ;;  %v522_v16 = vpop.f32.mrb[6].mxu0  ;;  %v559_v20 = vpop.f32.mrb[4].mxu1 }
 0x13e   :  { %v1623_v17 = vmul.f32 -1.442695, %v565_v13  ;;  %v523_v18 = vpop.f32.mrb[7].mxu0  ;;  %v1776_v21 = vpop.f32.mrb[5].mxu1 }
 0x13f   :  { %v1624_v19 = vmul.f32 -1.442695, %v566_v15  ;;  %v562_v22 = vpop.f32.mrb[6].mxu1 }
 0x140   :  { %2051 = vpow2.f32 %v1623_v17  ;;  %v1777_v24 = vpop.f32.mrb[7].mxu1 }
 0x141   :  { %2053 = vpow2.f32 %v1624_v19 }
 0x14a   :  { %v2052_v25 = vpop.eup %2051 }
 0x14b   :  { %v2054_v28 = vpop.eup %2053  ;;  %v573_v31 = vadd.f32 1.0, %v2052_v25 }
 0x14c   :  { %v574_v43 = vadd.f32 1.0, %v2054_v28 }
 0x14d   :  { %2055 = vrcp.f32 %v573_v31 }
 0x14e   :  { %2057 = vrcp.f32 %v574_v43 }
 0x157   :  { %v2056_v53 = vpop.eup %2055 }
 0x158   :  { %v2058_v56 = vpop.eup %2057  ;;  %v579_v57 = vmul.f32 %v2056_v53, %v559_v20 }
 0x159   :  { %v584_v58 = vmul.f32 %v2058_v56, %v1594_v51  ;;  %v582_v60 = vsub.f32 1.0, %v2058_v56 }
 0x15a   :  { %v580_v59 = vadd.f32 %v579_v57, %v2462_v5 }
 0x15c   :  { %2059 = vtanh.f32 %v580_v59 }
 0x166   :  { %v2060_v62 = vpop.eup %2059 }
 0x167   :  { %v583_v63 = vmul.f32 %v2060_v62, %v582_v60 }
 0x169   :  { %v2475_v2 = vadd.f32 %v584_v58, %v583_v63 }
 0x16b   :  { %v587_v3 = vpack.c.bf16 %v2475_v2, %v2475_v2  ;;  %v698_v56 = vrot.slane %v2475_v2, 7 }
 0x16d   :  { %621 = vmatmul.mubr.bf16.vlgmr.msra.gmra.mrb[8].mxu0 %v587_v3  ;;  %1795 = vmatmul.mubr.bf16.vlgmr.msra.gmra.mrb[8].mxu1 %v587_v3 }
 0x16e   :  { %712 = vmatpush1.bf16.msra.mxu0 %v2317_v26  ;;  %1799 = vmatpush3.bf16.msra.mxu1 %v2337_v34 }
 0x16f   :  { %713 = vmatprep.subr.bf16.mxu0 %v2319_v27  ;;  %1800 = vmatprep.subr.bf16.mxu1 %v2228_v0 }
 0x170   :  { %743 = vmatprep.mubr.bf16.mxu0 %v2229_v1  ;;  %1814 = vmatprep.mubr.msk.bf16.mxu1 %vm2230_vm0, %v2228_v0 }
 0x172   :  { %714 = vmatpush1.bf16.msra.mxu0 %v2323_v29  ;;  %1801 = vmatpush3.bf16.msra.mxu1 %v2347_v37 }
 0x173   :  { %715 = vmatprep.subr.bf16.mxu0 %v2326_v30  ;;  %1802 = vmatprep.subr.bf16.mxu1 %v2228_v0 }
 0x176   :  { %716 = vmatpush1.bf16.msra.mxu0 %v2332_v32  ;;  %1803 = vmatpush3.bf16.msra.mxu1 %v2359_v40 }
 0x177   :  { %717 = vmatprep.subr.bf16.mxu0 %v2335_v33  ;;  %1804 = vmatprep.subr.bf16.mxu1 %v2228_v0 }
 0x17a   :  { %718 = vmatpush1.bf16.msra.mxu0 %v2341_v35  ;;  %1805 = vmatpush3.bf16.msra.mxu1 %v2369_v44 }
 0x17b   :  { %719 = vmatprep.subr.bf16.mxu0 %v2344_v36  ;;  %1806 = vmatprep.subr.bf16.mxu1 %v2228_v0 }
 0x17e   :  { %720 = vmatpush1.bf16.msra.mxu0 %v2353_v38  ;;  %1807 = vmatpush3.bf16.msra.mxu1 %v2382_v48 }
 0x17f   :  { %721 = vmatprep.subr.bf16.mxu0 %v2356_v39  ;;  %1808 = vmatprep.subr.bf16.mxu1 %v2228_v0 }
 0x182   :  { %722 = vmatpush1.bf16.msra.mxu0 %v2363_v41  ;;  %1809 = vmatpush3.bf16.msra.mxu1 %v2391_v50 }
 0x183   :  { %723 = vmatprep.subr.bf16.mxu0 %v2366_v42  ;;  %1810 = vmatprep.subr.bf16.mxu1 %v2228_v0 }
 0x186   :  { %724 = vmatpush1.bf16.msra.mxu0 %v2373_v45  ;;  %1811 = vmatpush3.bf16.msra.mxu1 %v2403_v52 }
 0x187   :  { %725 = vmatprep.subr.bf16.mxu0 %v2376_v46  ;;  %1812 = vmatprep.subr.bf16.mxu1 %v2228_v0 }
 0x18a   :  { %726 = vmatpush1.bf16.msra.mxu0 %v2386_v49  ;;  %1813 = vmatpush3.bf16.msra.mxu1 %v2412_v54 }
 0x18b   :  { %832 = vmatprep.subr.bf16.mxu0 %v2311_v23  ;;  %1818 = vmatprep.subr.bf16.mxu1 %v2228_v0 }
 0x240   :  { %v622_v47 = vpop.f32.mrb[8].mxu0  ;;  %v663_v4 = vpop.f32.mrb[8].mxu1 }
 0x241   :  { %v671_v6 = vrot.slane %v622_v47, 7  ;;  %v624_v7 = vpop.f32.mrb[9].mxu0  ;;  %v1796_v8 = vpop.f32.mrb[9].mxu1  ;;  %v690_v25 = vrot.slane %v663_v4, 7 }
 0x242   :  { %v672_v10 = vrot.slane %v624_v7, 7  ;;  %v626_v12 = vpop.f32.mrb[10].mxu0  ;;  %v666_v13 = vpop.f32.mrb[10].mxu1 }
 0x243   :  { %v675_v14 = vadd.f32 %v671_v6, %v2467_v11  ;;  %v627_v15 = vpop.f32.mrb[11].mxu0  ;;  %v1797_v16 = vpop.f32.mrb[11].mxu1 }
 0x244   :  { %v676_v18 = vadd.f32 %v672_v10, %v2459_v61 }
 0x245   :  { %v1625_v17 = vmul.f32 -1.442695, %v675_v14 }
 0x246   :  { %v1626_v19 = vmul.f32 -1.442695, %v676_v18 }
 0x247   :  { %2061 = vpow2.f32 %v1625_v17 }
 0x248   :  { %2063 = vpow2.f32 %v1626_v19 }
 0x251   :  { %v2062_v20 = vpop.eup %2061 }
 0x252   :  { %v683_v21 = vadd.f32 1.0, %v2062_v20  ;;  %v2064_v22 = vpop.eup %2063 }
 0x253   :  { %v684_v24 = vadd.f32 1.0, %v2064_v22 }
 0x254   :  { %2065 = vrcp.f32 %v683_v21 }
 0x255   :  { %2067 = vrcp.f32 %v684_v24 }
 0x25e   :  { %v2066_v28 = vpop.eup %2065 }
 0x25f   :  { %v692_v31 = vmul.f32 %v2066_v28, %v690_v25  ;;  %v2068_v51 = vpop.eup %2067 }
 0x260   :  { %v695_v53 = vsub.f32 1.0, %v2068_v51  ;;  %v700_v59 = vmul.f32 %v2068_v51, %v698_v56 }
 0x261   :  { %v693_v43 = vadd.f32 %v692_v31, %v2462_v5 }
 0x263   :  { %2069 = vtanh.f32 %v693_v43 }
 0x26d   :  { %v2070_v57 = vpop.eup %2069 }
 0x26e   :  { %v696_v58 = vmul.f32 %v2070_v57, %v695_v53 }
 0x270   :  { %v2518_v60 = vadd.f32 %v700_v59, %v696_v58 }
 0x272   :  { %v706_v62 = vpack.c.bf16 %v2518_v60, %v2518_v60  ;;  %v820_v28 = vrot.slane %v2518_v60, 7  ;;  %v703_v58 = vrot.slane %v2518_v60, 1 }
 0x274   :  { %v708_v63 = vshrl.u32 %v706_v62, 16 }
 0x276   :  { %744 = vmatmul.mubr.bf16.vlgmr.msra.gmra.mrb[12].mxu0 %v708_v63  ;;  %1815 = vmatmul.mubr.bf16.vlgmr.msra.gmra.mrb[12].mxu1 %v708_v63  ;;  %v705_v63 = vadd.f32 %v703_v58, %v2475_v2 }
 0x277   :  { %833 = vmatpush1.bf16.msra.mxu0 %v2317_v26  ;;  %1819 = vmatpush3.bf16.msra.mxu1 %v2337_v34 }
 0x278   :  { %834 = vmatprep.subr.bf16.mxu0 %v2319_v27  ;;  %1820 = vmatprep.subr.bf16.mxu1 %v2228_v0 }
 0x279   :  { %864 = vmatprep.mubr.bf16.mxu0 %v2229_v1  ;;  %1834 = vmatprep.mubr.msk.bf16.mxu1 %vm2230_vm0, %v2228_v0 }
 0x27b   :  { %835 = vmatpush1.bf16.msra.mxu0 %v2323_v29  ;;  %1821 = vmatpush3.bf16.msra.mxu1 %v2347_v37 }
 0x27c   :  { %836 = vmatprep.subr.bf16.mxu0 %v2326_v30  ;;  %1822 = vmatprep.subr.bf16.mxu1 %v2228_v0 }
 0x27f   :  { %837 = vmatpush1.bf16.msra.mxu0 %v2332_v32  ;;  %1823 = vmatpush3.bf16.msra.mxu1 %v2359_v40 }
 0x280   :  { %838 = vmatprep.subr.bf16.mxu0 %v2335_v33  ;;  %1824 = vmatprep.subr.bf16.mxu1 %v2228_v0 }
 0x283   :  { %839 = vmatpush1.bf16.msra.mxu0 %v2341_v35  ;;  %1825 = vmatpush3.bf16.msra.mxu1 %v2369_v44 }
 0x284   :  { %840 = vmatprep.subr.bf16.mxu0 %v2344_v36  ;;  %1826 = vmatprep.subr.bf16.mxu1 %v2228_v0 }
 0x287   :  { %841 = vmatpush1.bf16.msra.mxu0 %v2353_v38  ;;  %1827 = vmatpush3.bf16.msra.mxu1 %v2382_v48 }
 0x288   :  { %842 = vmatprep.subr.bf16.mxu0 %v2356_v39  ;;  %1828 = vmatprep.subr.bf16.mxu1 %v2228_v0 }
 0x28b   :  { %843 = vmatpush1.bf16.msra.mxu0 %v2363_v41  ;;  %1829 = vmatpush3.bf16.msra.mxu1 %v2391_v50 }
 0x28c   :  { %844 = vmatprep.subr.bf16.mxu0 %v2366_v42  ;;  %1830 = vmatprep.subr.bf16.mxu1 %v2228_v0 }
 0x28f   :  { %845 = vmatpush1.bf16.msra.mxu0 %v2373_v45  ;;  %1831 = vmatpush3.bf16.msra.mxu1 %v2403_v52 }
 0x290   :  { %846 = vmatprep.subr.bf16.mxu0 %v2376_v46  ;;  %1832 = vmatprep.subr.bf16.mxu1 %v2228_v0 }
 0x293   :  { %847 = vmatpush1.bf16.msra.mxu0 %v2386_v49  ;;  %1833 = vmatpush3.bf16.msra.mxu1 %v2412_v54 }
 0x294   :  { %955 = vmatprep.subr.bf16.mxu0 %v2311_v23  ;;  %1838 = vmatprep.subr.bf16.mxu1 %v2228_v0 }
 0x349   :  { %v745_v3 = vpop.f32.mrb[12].mxu0  ;;  %v786_v47 = vpop.f32.mrb[12].mxu1 }
 0x34a   :  { %v794_v4 = vrot.slane %v745_v3, 6  ;;  %v747_v6 = vpop.f32.mrb[13].mxu0  ;;  %v1816_v7 = vpop.f32.mrb[13].mxu1  ;;  %v813_v24 = vrot.slane %v786_v47, 6 }
 0x34b   :  { %v795_v8 = vrot.slane %v747_v6, 6  ;;  %v749_v10 = vpop.f32.mrb[14].mxu0  ;;  %v789_v12 = vpop.f32.mrb[14].mxu1 }
 0x34c   :  { %v798_v13 = vadd.f32 %v794_v4, %v2467_v11  ;;  %v750_v14 = vpop.f32.mrb[15].mxu0  ;;  %v1817_v15 = vpop.f32.mrb[15].mxu1 }
 0x34d   :  { %v799_v16 = vadd.f32 %v795_v8, %v2459_v61 }
 0x34e   :  { %v1627_v17 = vmul.f32 -1.442695, %v798_v13 }
 0x34f   :  { %v1628_v18 = vmul.f32 -1.442695, %v799_v16 }
 0x350   :  { %2071 = vpow2.f32 %v1627_v17 }
 0x351   :  { %2073 = vpow2.f32 %v1628_v18 }
 0x35a   :  { %v2072_v19 = vpop.eup %2071 }
 0x35b   :  { %v2074_v20 = vpop.eup %2073  ;;  %v806_v21 = vadd.f32 1.0, %v2072_v19 }
 0x35c   :  { %v807_v22 = vadd.f32 1.0, %v2074_v20 }
 0x35d   :  { %2075 = vrcp.f32 %v806_v21 }
 0x35e   :  { %2077 = vrcp.f32 %v807_v22 }
 0x367   :  { %v2076_v25 = vpop.eup %2075 }
 0x368   :  { %v2078_v31 = vpop.eup %2077  ;;  %v815_v43 = vmul.f32 %v2076_v25, %v813_v24 }
 0x369   :  { %v822_v51 = vmul.f32 %v2078_v31, %v820_v28  ;;  %v818_v56 = vsub.f32 1.0, %v2078_v31 }
 0x36a   :  { %v816_v53 = vadd.f32 %v815_v43, %v2462_v5 }
 0x36c   :  { %2079 = vtanh.f32 %v816_v53 }
 0x376   :  { %v2080_v57 = vpop.eup %2079 }
 0x377   :  { %v819_v59 = vmul.f32 %v2080_v57, %v818_v56 }
 0x379   :  { %v2562_v62 = vadd.f32 %v822_v51, %v819_v59 }
 0x37b   :  { %v825_v3 = vrot.slane %v2562_v62, 2  ;;  %v828_v47 = vpack.c.bf16 %v2562_v62, %v2562_v62  ;;  %v941_v43 = vrot.slane %v2562_v62, 7 }
 0x37d   :  { %v2568_v4 = vadd.f32 %v825_v3, %v705_v63  ;;  %v830_v6 = vrot.slane %v828_v47, 1 }
 0x37f   :  { %865 = vmatmul.mubr.bf16.vlgmr.msra.gmra.mrb[16].mxu0 %v830_v6  ;;  %1835 = vmatmul.mubr.bf16.vlgmr.msra.gmra.mrb[16].mxu1 %v830_v6 }
 0x380   :  { %956 = vmatpush1.bf16.msra.mxu0 %v2317_v26  ;;  %1839 = vmatpush3.bf16.msra.mxu1 %v2337_v34 }
 0x381   :  { %957 = vmatprep.subr.bf16.mxu0 %v2319_v27  ;;  %1840 = vmatprep.subr.bf16.mxu1 %v2228_v0 }
 0x382   :  { %987 = vmatprep.mubr.bf16.mxu0 %v2229_v1  ;;  %1854 = vmatprep.mubr.msk.bf16.mxu1 %vm2230_vm0, %v2228_v0 }
 0x384   :  { %958 = vmatpush1.bf16.msra.mxu0 %v2323_v29  ;;  %1841 = vmatpush3.bf16.msra.mxu1 %v2347_v37 }
 0x385   :  { %959 = vmatprep.subr.bf16.mxu0 %v2326_v30  ;;  %1842 = vmatprep.subr.bf16.mxu1 %v2228_v0 }
 0x388   :  { %960 = vmatpush1.bf16.msra.mxu0 %v2332_v32  ;;  %1843 = vmatpush3.bf16.msra.mxu1 %v2359_v40 }
 0x389   :  { %961 = vmatprep.subr.bf16.mxu0 %v2335_v33  ;;  %1844 = vmatprep.subr.bf16.mxu1 %v2228_v0 }
 0x38c   :  { %962 = vmatpush1.bf16.msra.mxu0 %v2341_v35  ;;  %1845 = vmatpush3.bf16.msra.mxu1 %v2369_v44 }
 0x38d   :  { %963 = vmatprep.subr.bf16.mxu0 %v2344_v36  ;;  %1846 = vmatprep.subr.bf16.mxu1 %v2228_v0 }
 0x390   :  { %964 = vmatpush1.bf16.msra.mxu0 %v2353_v38  ;;  %1847 = vmatpush3.bf16.msra.mxu1 %v2382_v48 }
 0x391   :  { %965 = vmatprep.subr.bf16.mxu0 %v2356_v39  ;;  %1848 = vmatprep.subr.bf16.mxu1 %v2228_v0 }
 0x394   :  { %966 = vmatpush1.bf16.msra.mxu0 %v2363_v41  ;;  %1849 = vmatpush3.bf16.msra.mxu1 %v2391_v50 }
 0x395   :  { %967 = vmatprep.subr.bf16.mxu0 %v2366_v42  ;;  %1850 = vmatprep.subr.bf16.mxu1 %v2228_v0 }
 0x398   :  { %968 = vmatpush1.bf16.msra.mxu0 %v2373_v45  ;;  %1851 = vmatpush3.bf16.msra.mxu1 %v2403_v52 }
 0x399   :  { %969 = vmatprep.subr.bf16.mxu0 %v2376_v46  ;;  %1852 = vmatprep.subr.bf16.mxu1 %v2228_v0 }
 0x39c   :  { %970 = vmatpush1.bf16.msra.mxu0 %v2386_v49  ;;  %1853 = vmatpush3.bf16.msra.mxu1 %v2412_v54 }
 0x39d   :  { %1076 = vmatprep.subr.bf16.mxu0 %v2311_v23  ;;  %1858 = vmatprep.subr.bf16.mxu1 %v2228_v0 }
 0x452   :  { %v866_v2 = vpop.f32.mrb[16].mxu0  ;;  %v907_v60 = vpop.f32.mrb[16].mxu1 }
 0x453   :  { %v915_v7 = vrot.slane %v866_v2, 5  ;;  %v868_v8 = vpop.f32.mrb[17].mxu0  ;;  %v1836_v10 = vpop.f32.mrb[17].mxu1  ;;  %v934_v28 = vrot.slane %v907_v60, 5 }
 0x454   :  { %v916_v12 = vrot.slane %v868_v8, 5  ;;  %v870_v13 = vpop.f32.mrb[18].mxu0  ;;  %v910_v14 = vpop.f32.mrb[18].mxu1 }
 0x455   :  { %v919_v15 = vadd.f32 %v915_v7, %v2467_v11  ;;  %v871_v16 = vpop.f32.mrb[19].mxu0  ;;  %v1837_v17 = vpop.f32.mrb[19].mxu1 }
 0x456   :  { %v920_v18 = vadd.f32 %v916_v12, %v2459_v61 }
 0x457   :  { %v1629_v19 = vmul.f32 -1.442695, %v919_v15 }
 0x458   :  { %v1630_v20 = vmul.f32 -1.442695, %v920_v18 }
 0x459   :  { %2081 = vpow2.f32 %v1629_v19 }
 0x45a   :  { %2083 = vpow2.f32 %v1630_v20 }
 0x463   :  { %v2082_v21 = vpop.eup %2081 }
 0x464   :  { %v2084_v22 = vpop.eup %2083  ;;  %v927_v24 = vadd.f32 1.0, %v2082_v21 }
 0x465   :  { %v928_v25 = vadd.f32 1.0, %v2084_v22 }
 0x466   :  { %2085 = vrcp.f32 %v927_v24 }
 0x467   :  { %2087 = vrcp.f32 %v928_v25 }
 0x470   :  { %v2086_v31 = vpop.eup %2085 }
 0x471   :  { %v2088_v51 = vpop.eup %2087  ;;  %v936_v53 = vmul.f32 %v2086_v31, %v934_v28 }
 0x472   :  { %v943_v56 = vmul.f32 %v2088_v51, %v941_v43  ;;  %v939_v58 = vsub.f32 1.0, %v2088_v51 }
 0x473   :  { %v937_v57 = vadd.f32 %v936_v53, %v2462_v5 }
 0x475   :  { %2089 = vtanh.f32 %v937_v57 }
 0x47f   :  { %v2090_v59 = vpop.eup %2089 }
 0x480   :  { %v940_v63 = vmul.f32 %v2090_v59, %v939_v58 }
 0x482   :  { %v2609_v3 = vadd.f32 %v943_v56, %v940_v63 }
 0x484   :  { %v946_v47 = vrot.slane %v2609_v3, 3  ;;  %v949_v6 = vpack.c.bf16 %v2609_v3, %v2609_v3  ;;  %v1064_v43 = vrot.slane %v2609_v3, 7 }
 0x486   :  { %v2615_v2 = vadd.f32 %v946_v47, %v2568_v4  ;;  %v951_v62 = vshrl.u32 %v949_v6, 16 }
 0x488   :  { %v953_v60 = vrot.slane %v951_v62, 1 }
 0x48a   :  { %988 = vmatmul.mubr.bf16.vlgmr.msra.gmra.mrb[20].mxu0 %v953_v60  ;;  %1855 = vmatmul.mubr.bf16.vlgmr.msra.gmra.mrb[20].mxu1 %v953_v60 }
 0x48b   :  { %1077 = vmatpush1.bf16.msra.mxu0 %v2317_v26  ;;  %1859 = vmatpush3.bf16.msra.mxu1 %v2337_v34 }
 0x48c   :  { %1078 = vmatprep.subr.bf16.mxu0 %v2319_v27  ;;  %1860 = vmatprep.subr.bf16.mxu1 %v2228_v0 }
 0x48d   :  { %1108 = vmatprep.mubr.bf16.mxu0 %v2229_v1  ;;  %1874 = vmatprep.mubr.msk.bf16.mxu1 %vm2230_vm0, %v2228_v0 }
 0x48f   :  { %1079 = vmatpush1.bf16.msra.mxu0 %v2323_v29  ;;  %1861 = vmatpush3.bf16.msra.mxu1 %v2347_v37 }
 0x490   :  { %1080 = vmatprep.subr.bf16.mxu0 %v2326_v30  ;;  %1862 = vmatprep.subr.bf16.mxu1 %v2228_v0 }
 0x493   :  { %1081 = vmatpush1.bf16.msra.mxu0 %v2332_v32  ;;  %1863 = vmatpush3.bf16.msra.mxu1 %v2359_v40 }
 0x494   :  { %1082 = vmatprep.subr.bf16.mxu0 %v2335_v33  ;;  %1864 = vmatprep.subr.bf16.mxu1 %v2228_v0 }
 0x497   :  { %1083 = vmatpush1.bf16.msra.mxu0 %v2341_v35  ;;  %1865 = vmatpush3.bf16.msra.mxu1 %v2369_v44 }
 0x498   :  { %1084 = vmatprep.subr.bf16.mxu0 %v2344_v36  ;;  %1866 = vmatprep.subr.bf16.mxu1 %v2228_v0 }
 0x49b   :  { %1085 = vmatpush1.bf16.msra.mxu0 %v2353_v38  ;;  %1867 = vmatpush3.bf16.msra.mxu1 %v2382_v48 }
 0x49c   :  { %1086 = vmatprep.subr.bf16.mxu0 %v2356_v39  ;;  %1868 = vmatprep.subr.bf16.mxu1 %v2228_v0 }
 0x49f   :  { %1087 = vmatpush1.bf16.msra.mxu0 %v2363_v41  ;;  %1869 = vmatpush3.bf16.msra.mxu1 %v2391_v50 }
 0x4a0   :  { %1088 = vmatprep.subr.bf16.mxu0 %v2366_v42  ;;  %1870 = vmatprep.subr.bf16.mxu1 %v2228_v0 }
 0x4a3   :  { %1089 = vmatpush1.bf16.msra.mxu0 %v2373_v45  ;;  %1871 = vmatpush3.bf16.msra.mxu1 %v2403_v52 }
 0x4a4   :  { %1090 = vmatprep.subr.bf16.mxu0 %v2376_v46  ;;  %1872 = vmatprep.subr.bf16.mxu1 %v2228_v0 }
 0x4a7   :  { %1091 = vmatpush1.bf16.msra.mxu0 %v2386_v49  ;;  %1873 = vmatpush3.bf16.msra.mxu1 %v2412_v54 }
 0x4a8   :  { %1199 = vmatprep.subr.bf16.mxu0 %v2311_v23  ;;  %1878 = vmatprep.subr.bf16.mxu1 %v2228_v0 }
 0x55d   :  { %v989_v4 = vpop.f32.mrb[20].mxu0  ;;  %v1030_v7 = vpop.f32.mrb[20].mxu1 }
 0x55e   :  { %v1038_v8 = vrot.slane %v989_v4, 4  ;;  %v991_v10 = vpop.f32.mrb[21].mxu0  ;;  %v1856_v12 = vpop.f32.mrb[21].mxu1  ;;  %v1057_v28 = vrot.slane %v1030_v7, 4 }
 0x55f   :  { %v1039_v13 = vrot.slane %v991_v10, 4  ;;  %v993_v14 = vpop.f32.mrb[22].mxu0  ;;  %v1033_v15 = vpop.f32.mrb[22].mxu1 }
 0x560   :  { %v1042_v16 = vadd.f32 %v1038_v8, %v2467_v11  ;;  %v994_v17 = vpop.f32.mrb[23].mxu0  ;;  %v1857_v18 = vpop.f32.mrb[23].mxu1 }
 0x561   :  { %v1043_v19 = vadd.f32 %v1039_v13, %v2459_v61 }
 0x562   :  { %v1631_v20 = vmul.f32 -1.442695, %v1042_v16 }
 0x563   :  { %v1632_v21 = vmul.f32 -1.442695, %v1043_v19 }
 0x564   :  { %2091 = vpow2.f32 %v1631_v20 }
 0x565   :  { %2093 = vpow2.f32 %v1632_v21 }
 0x56e   :  { %v2092_v23 = vpop.eup %2091 }
 0x56f   :  { %v2094_v22 = vpop.eup %2093  ;;  %v1050_v24 = vadd.f32 1.0, %v2092_v23 }
 0x570   :  { %v1051_v25 = vadd.f32 1.0, %v2094_v22 }
 0x571   :  { %2095 = vrcp.f32 %v1050_v24 }
 0x572   :  { %2097 = vrcp.f32 %v1051_v25 }
 0x57b   :  { %v2096_v31 = vpop.eup %2095 }
 0x57c   :  { %v2098_v51 = vpop.eup %2097  ;;  %v1059_v53 = vmul.f32 %v2096_v31, %v1057_v28  ;;  %v2136_v28 = vld [vmem:[#allocation5] ss:$12 sps:$4 sm:$0xff]   ;;  %v2137_v31 = vld [vmem:[#allocation5 + $0x8] ss:$12 sps:$4 sm:$0xff]  }
 0x57d   :  { %v1066_v56 = vmul.f32 %v2098_v51, %v1064_v43  ;;  %v1062_v58 = vsub.f32 1.0, %v2098_v51  ;;  %v2138_v43 = vld [vmem:[#allocation5 + $0x1c] ss:$12 sps:$4 sm:$0xff]   ;;  %v2139_v51 = vld [vmem:[#allocation5 + $0x18] ss:$12 sps:$4 sm:$0xff]  }
 0x57e   :  { %v1060_v57 = vadd.f32 %v1059_v53, %v2462_v5  ;;  %v2140_v53 = vld [vmem:[#allocation5 + $0x20] ss:$12 sps:$4 sm:$0xff]  }
 0x580   :  { %2099 = vtanh.f32 %v1060_v57  ;;  %v2142_v57 = vld [vmem:[#allocation5 + $0x30] ss:$12 sps:$4 sm:$0xff]  }
 0x58a   :  { %v2100_v59 = vpop.eup %2099 }
 0x58b   :  { %v1063_v63 = vmul.f32 %v2100_v59, %v1062_v58  ;;  %v2143_v58 = vld [vmem:[#allocation5 + $0x4c] ss:$12 sps:$4 sm:$0xff]   ;;  %v2145_v59 = vld [vmem:[#allocation5 + $0x64] ss:$12 sps:$4 sm:$0xff]  }
 0x58d   :  { %v2656_v47 = vadd.f32 %v1066_v56, %v1063_v63  ;;  %v2141_v56 = vld [vmem:[#allocation5 + $0x34] ss:$12 sps:$4 sm:$0xff]  }
 0x58e   :  { %v2146_v63 = vld [vmem:[#allocation5 + $0x60] ss:$12 sps:$4 sm:$0xff]  }
 0x58f   :  { %v1069_v6 = vrot.slane %v2656_v47, 4  ;;  %v1072_v62 = vpack.c.bf16 %v2656_v47, %v2656_v47  ;;  %v1185_v12 = vrot.slane %v2656_v47, 7  ;;  %v2147_v47 = vld [vmem:[#allocation5 + $0x7c] ss:$12 sps:$4 sm:$0xff]  }
 0x591   :  { %v2662_v60 = vadd.f32 %v1069_v6, %v2615_v2  ;;  %v1074_v3 = vrot.slane %v1072_v62, 2  ;;  %v2149_v6 = vld [vmem:[#allocation5 + $0x94] ss:$12 sps:$4 sm:$0xff]   ;;  %v2151_v62 = vld [vmem:[#allocation5 + $0xac] ss:$12 sps:$4 sm:$0xff]  }
 0x593   :  { %1109 = vmatmul.mubr.bf16.vlgmr.msra.gmra.mrb[24].mxu0 %v1074_v3  ;;  %1875 = vmatmul.mubr.bf16.vlgmr.msra.gmra.mrb[24].mxu1 %v1074_v3 }
 0x594   :  { %1200 = vmatpush1.bf16.msra.mxu0 %v2317_v26  ;;  %1879 = vmatpush3.bf16.msra.mxu1 %v2337_v34  ;;  %v2135_v26 = vld [vmem:[#allocation5 + $0x4] ss:$12 sps:$4 sm:$0xff]  }
 0x595   :  { %1201 = vmatprep.subr.bf16.mxu0 %v2319_v27  ;;  %1880 = vmatprep.subr.bf16.mxu1 %v2228_v0 }
 0x596   :  { %1231 = vmatprep.mubr.bf16.mxu0 %v2229_v1  ;;  %1894 = vmatprep.mubr.msk.bf16.mxu1 %vm2230_vm0, %v2228_v0 }
 0x598   :  { %1202 = vmatpush1.bf16.msra.mxu0 %v2323_v29  ;;  %1881 = vmatpush3.bf16.msra.mxu1 %v2347_v37 }
 0x599   :  { %1203 = vmatprep.subr.bf16.mxu0 %v2326_v30  ;;  %1882 = vmatprep.subr.bf16.mxu1 %v2228_v0 }
 0x59c   :  { %1204 = vmatpush1.bf16.msra.mxu0 %v2332_v32  ;;  %1883 = vmatpush3.bf16.msra.mxu1 %v2359_v40 }
 0x59d   :  { %1205 = vmatprep.subr.bf16.mxu0 %v2335_v33  ;;  %1884 = vmatprep.subr.bf16.mxu1 %v2228_v0 }
 0x5a0   :  { %1206 = vmatpush1.bf16.msra.mxu0 %v2341_v35  ;;  %1885 = vmatpush3.bf16.msra.mxu1 %v2369_v44 }
 0x5a1   :  { %1207 = vmatprep.subr.bf16.mxu0 %v2344_v36  ;;  %1886 = vmatprep.subr.bf16.mxu1 %v2228_v0 }
 0x5a4   :  { %1208 = vmatpush1.bf16.msra.mxu0 %v2353_v38  ;;  %1887 = vmatpush3.bf16.msra.mxu1 %v2382_v48 }
 0x5a5   :  { %1209 = vmatprep.subr.bf16.mxu0 %v2356_v39  ;;  %1888 = vmatprep.subr.bf16.mxu1 %v2228_v0 }
 0x5a8   :  { %1210 = vmatpush1.bf16.msra.mxu0 %v2363_v41  ;;  %1889 = vmatpush3.bf16.msra.mxu1 %v2391_v50 }
 0x5a9   :  { %1211 = vmatprep.subr.bf16.mxu0 %v2366_v42  ;;  %1890 = vmatprep.subr.bf16.mxu1 %v2228_v0 }
 0x5ac   :  { %1212 = vmatpush1.bf16.msra.mxu0 %v2373_v45  ;;  %1891 = vmatpush3.bf16.msra.mxu1 %v2403_v52 }
 0x5ad   :  { %1213 = vmatprep.subr.bf16.mxu0 %v2376_v46  ;;  %1892 = vmatprep.subr.bf16.mxu1 %v2228_v0 }
 0x5b0   :  { %1214 = vmatpush1.bf16.msra.mxu0 %v2386_v49  ;;  %1893 = vmatpush3.bf16.msra.mxu1 %v2412_v54 }
 0x5b1   :  { %1320 = vmatprep.subr.bf16.mxu0 %v2135_v26  ;;  %1898 = vmatprep.subr.bf16.mxu1 %v2228_v0 }
 0x666   :  { %v1110_v27 = vpop.f32.mrb[24].mxu0  ;;  %v1151_v29 = vpop.f32.mrb[24].mxu1 }
 0x667   :  { %v1159_v30 = vrot.slane %v1110_v27, 3  ;;  %v1112_v32 = vpop.f32.mrb[25].mxu0  ;;  %v1876_v33 = vpop.f32.mrb[25].mxu1  ;;  %v1178_v8 = vrot.slane %v1151_v29, 3 }
 0x668   :  { %v1160_v34 = vrot.slane %v1112_v32, 3  ;;  %v1114_v35 = vpop.f32.mrb[26].mxu0  ;;  %v1154_v36 = vpop.f32.mrb[26].mxu1 }
 0x669   :  { %v1163_v37 = vadd.f32 %v1159_v30, %v2467_v11  ;;  %v1115_v38 = vpop.f32.mrb[27].mxu0  ;;  %v1877_v39 = vpop.f32.mrb[27].mxu1 }
 0x66a   :  { %v1164_v41 = vadd.f32 %v1160_v34, %v2459_v61 }
 0x66b   :  { %v1633_v42 = vmul.f32 -1.442695, %v1163_v37 }
 0x66c   :  { %v1634_v45 = vmul.f32 -1.442695, %v1164_v41 }
 0x66d   :  { %2101 = vpow2.f32 %v1633_v42 }
 0x66e   :  { %2103 = vpow2.f32 %v1634_v45 }
 0x677   :  { %v2102_v46 = vpop.eup %2101 }
 0x678   :  { %v2104_v2 = vpop.eup %2103  ;;  %v1171_v4 = vadd.f32 1.0, %v2102_v46 }
 0x679   :  { %v1172_v7 = vadd.f32 1.0, %v2104_v2 }
 0x67a   :  { %2105 = vrcp.f32 %v1171_v4 }
 0x67b   :  { %2107 = vrcp.f32 %v1172_v7 }
 0x684   :  { %v2106_v10 = vpop.eup %2105 }
 0x685   :  { %v2108_v13 = vpop.eup %2107  ;;  %v1180_v14 = vmul.f32 %v2106_v10, %v1178_v8 }
 0x686   :  { %v1187_v15 = vmul.f32 %v2108_v13, %v1185_v12  ;;  %v1183_v17 = vsub.f32 1.0, %v2108_v13 }
 0x687   :  { %v1181_v16 = vadd.f32 %v1180_v14, %v2462_v5 }
 0x689   :  { %2109 = vtanh.f32 %v1181_v16 }
 0x693   :  { %v2110_v18 = vpop.eup %2109 }
 0x694   :  { %v1184_v19 = vmul.f32 %v2110_v18, %v1183_v17  ;;  %v1448_v17 = vld [vmem:[%s2826_s6] sm:$0xff]  ;;  %v1449_v18 = vld [vmem:[%s2826_s6 + $0x8] sm:$0xff] }
 0x696   :  { %v2702_v20 = vadd.f32 %v1187_v15, %v1184_v19  ;;  %v1954_v19 = vpack.c.bf16 %v1449_v18, %v1448_v17  ;;  %v1639_v18 = vld [vmem:[%s2827_s7] ss:$0 sm:$0xff] }
 0x698   :  { %v1190_v21 = vrot.slane %v2702_v20, 5  ;;  %v1193_v23 = vpack.c.bf16 %v2702_v20, %v2702_v20  ;;  %v1308_v42 = vrot.slane %v2702_v20, 7  ;;  %v2232_v20 = vmov 0.0|0.0  }
 0x69a   :  { %v1195_v22 = vshrl.u32 %v1193_v23, 16  ;;  %v2708_v24 = vadd.f32 %v1190_v21, %v2662_v60  ;;  %v1450_v21 = vld [vmem:[%s2826_s6 + $0x10] sm:$0xff] }
 0x69c   :  { %v1197_v25 = vrot.slane %v1195_v22, 2  ;;  %v1452_v22 = vld [vmem:[%s2826_s6 + $0x20] sm:$0xff] }
 0x69e   :  { %1232 = vmatmul.mubr.bf16.vlgmr.msra.gmra.mrb[28].mxu0 %v1197_v25  ;;  %1895 = vmatmul.mubr.bf16.vlgmr.msra.gmra.mrb[28].mxu1 %v1197_v25 }
 0x69f   :  { %1321 = vmatpush1.bf16.msra.mxu0 %v2136_v28  ;;  %1899 = vmatpush3.bf16.msra.mxu1 %v2137_v31  ;;  %v1454_v28 = vld [vmem:[%s2826_s6 + $0x30] sm:$0xff]  ;;  %v1455_v31 = vld [vmem:[%s2826_s6 + $0x38] sm:$0xff] }
 0x6a0   :  { %1322 = vmatprep.subr.bf16.mxu0 %v2138_v43  ;;  %1900 = vmatprep.subr.bf16.mxu1 %v2228_v0  ;;  %v1963_v43 = vpack.c.bf16 %v1455_v31, %v1454_v28 }
 0x6a1   :  { %1352 = vmatprep.mubr.bf16.mxu0 %v2229_v1  ;;  %1914 = vmatprep.mubr.msk.bf16.mxu1 %vm2230_vm0, %v2228_v0  ;;  %v2144_v1 = vld [vmem:[#allocation5 + $0x48] ss:$12 sps:$4 sm:$0xff]  }
 0x6a3   :  { %1323 = vmatpush1.bf16.msra.mxu0 %v2139_v51  ;;  %1901 = vmatpush3.bf16.msra.mxu1 %v2140_v53  ;;  %v1456_v51 = vld [vmem:[%s2826_s6 + $0x40] sm:$0xff]  ;;  %v1457_v53 = vld [vmem:[%s2826_s6 + $0x48] sm:$0xff] }
 0x6a4   :  { %1324 = vmatprep.subr.bf16.mxu0 %v2141_v56  ;;  %1902 = vmatprep.subr.bf16.mxu1 %v2228_v0  ;;  %v1966_v56 = vpack.c.bf16 %v1457_v53, %v1456_v51 }
 0x6a7   :  { %1325 = vmatpush1.bf16.msra.mxu0 %v2142_v57  ;;  %1903 = vmatpush3.bf16.msra.mxu1 %v2359_v40  ;;  %v2148_v40 = vld [vmem:[#allocation5 + $0x78] ss:$12 sps:$4 sm:$0xff]   ;;  %v1458_v57 = vld [vmem:[%s2826_s6 + $0x50] sm:$0xff] }
 0x6a8   :  { %1326 = vmatprep.subr.bf16.mxu0 %v2143_v58  ;;  %1904 = vmatprep.subr.bf16.mxu1 %v2228_v0  ;;  %v1459_v58 = vld [vmem:[%s2826_s6 + $0x58] sm:$0xff] }
 0x6ab   :  { %1327 = vmatpush1.bf16.msra.mxu0 %v2144_v1  ;;  %1905 = vmatpush3.bf16.msra.mxu1 %v2369_v44  ;;  %v2150_v44 = vld [vmem:[#allocation5 + $0x90] ss:$12 sps:$4 sm:$0xff]   ;;  %v1969_v1 = vpack.c.bf16 %v1459_v58, %v1458_v57 }
 0x6ac   :  { %1328 = vmatprep.subr.bf16.mxu0 %v2145_v59  ;;  %1906 = vmatprep.subr.bf16.mxu1 %v2228_v0  ;;  %v1460_v59 = vld [vmem:[%s2826_s6 + $0x60] sm:$0xff] }
 0x6af   :  { %1329 = vmatpush1.bf16.msra.mxu0 %v2146_v63  ;;  %1907 = vmatpush3.bf16.msra.mxu1 %v2382_v48  ;;  %v1461_v63 = vld [vmem:[%s2826_s6 + $0x68] sm:$0xff] }
 0x6b0   :  { %1330 = vmatprep.subr.bf16.mxu0 %v2147_v47  ;;  %1908 = vmatprep.subr.bf16.mxu1 %v2228_v0  ;;  %v1972_v47 = vpack.c.bf16 %v1461_v63, %v1460_v59 }
 0x6b3   :  { %1331 = vmatpush1.bf16.msra.mxu0 %v2148_v40  ;;  %1909 = vmatpush3.bf16.msra.mxu1 %v2391_v50  ;;  %v1462_v40 = vld [vmem:[%s2826_s6 + $0x70] sm:$0xff] }
 0x6b4   :  { %1332 = vmatprep.subr.bf16.mxu0 %v2149_v6  ;;  %1910 = vmatprep.subr.bf16.mxu1 %v2228_v0  ;;  %v1463_v6 = vld [vmem:[%s2826_s6 + $0x78] sm:$0xff] }
 0x6b7   :  { %1333 = vmatpush1.bf16.msra.mxu0 %v2150_v44  ;;  %1911 = vmatpush3.bf16.msra.mxu1 %v2403_v52  ;;  %v1975_v44 = vpack.c.bf16 %v1463_v6, %v1462_v40 }
 0x6b8   :  { %1334 = vmatprep.subr.bf16.mxu0 %v2151_v62  ;;  %1912 = vmatprep.subr.bf16.mxu1 %v2228_v0 }
 0x6bb   :  { %1335 = vmatpush1.bf16.msra.mxu0 %v2386_v49  ;;  %1913 = vmatpush3.bf16.msra.mxu1 %v2412_v54 }
 0x6bc   :  { %1953 = vmatprep.subr.bf16.mxu0 %v2232_v20 }
 0x771   :  { %v1233_v48 = vpop.f32.mrb[28].mxu0  ;;  %v1274_v60 = vpop.f32.mrb[28].mxu1 }
 0x772   :  { %v1282_v3 = vrot.slane %v1233_v48, 2  ;;  %v1235_v50 = vpop.f32.mrb[29].mxu0  ;;  %v1896_v26 = vpop.f32.mrb[29].mxu1  ;;  %v1301_v39 = vrot.slane %v1274_v60, 2 }
 0x773   :  { %v1283_v27 = vrot.slane %v1235_v50, 2  ;;  %v1237_v29 = vpop.f32.mrb[30].mxu0  ;;  %v1277_v30 = vpop.f32.mrb[30].mxu1 }
 0x774   :  { %v1286_v32 = vadd.f32 %v1282_v3, %v2467_v11  ;;  %v1238_v33 = vpop.f32.mrb[31].mxu0  ;;  %v1897_v52 = vpop.f32.mrb[31].mxu1 }
 0x775   :  { %v1287_v34 = vadd.f32 %v1283_v27, %v2459_v61 }
 0x776   :  { %v1635_v35 = vmul.f32 -1.442695, %v1286_v32 }
 0x777   :  { %v1636_v36 = vmul.f32 -1.442695, %v1287_v34 }
 0x778   :  { %2111 = vpow2.f32 %v1635_v35 }
 0x779   :  { %2113 = vpow2.f32 %v1636_v36 }
 0x782   :  { %v2112_v49 = vpop.eup %2111 }
 0x783   :  { %v2114_v54 = vpop.eup %2113  ;;  %v1294_v37 = vadd.f32 1.0, %v2112_v49 }
 0x784   :  { %v1295_v38 = vadd.f32 1.0, %v2114_v54 }
 0x785   :  { %2115 = vrcp.f32 %v1294_v37 }
 0x786   :  { %2117 = vrcp.f32 %v1295_v38 }
 0x78f   :  { %v2116_v41 = vpop.eup %2115 }
 0x790   :  { %v2118_v45 = vpop.eup %2117  ;;  %v1303_v46 = vmul.f32 %v2116_v41, %v1301_v39 }
 0x791   :  { %v1310_v2 = vmul.f32 %v2118_v45, %v1308_v42  ;;  %v1306_v7 = vsub.f32 1.0, %v2118_v45 }
 0x792   :  { %v1304_v4 = vadd.f32 %v1303_v46, %v2462_v5 }
 0x794   :  { %2119 = vtanh.f32 %v1304_v4 }
 0x79e   :  { %v2120_v8 = vpop.eup %2119 }
 0x79f   :  { %v1307_v10 = vmul.f32 %v2120_v8, %v1306_v7 }
 0x7a1   :  { %v2731_v12 = vadd.f32 %v1310_v2, %v1307_v10 }
 0x7a3   :  { %v1313_v13 = vrot.slane %v2731_v12, 6  ;;  %v1316_v14 = vpack.c.bf16 %v2731_v12, %v2731_v12  ;;  %v1429_v41 = vrot.slane %v2731_v12, 7  ;;  %v1440_v12 = vld [vmem:[%s2825_s5] sm:$0xf] }
 0x7a5   :  { %v1318_v15 = vrot.slane %v1316_v14, 3  ;;  %v2737_v16 = vadd.f32 %v1313_v13, %v2708_v24  ;;  %v1453_v24 = vld [vmem:[%s2826_s6 + $0x28] sm:$0xff]  ;;  %v1438_v13 = vld [vmem:[%s2824_s4] sm:$0x1]  ;;  %s2233_s4 = smov [#allocation7]  }
 0x7a6   :  { %v1960_v25 = vpack.c.bf16 %v1453_v24, %v1452_v22  ;;  %s1560_s5 = sshll.u32 %s2233_s4, 4  ;;  %s1561_s5 = int_to_ptr.vmem [resolvable:$true] %s1560_s5 }
 0x7a7   :  { %1353 = vmatmul.mubr.bf16.vlgmr.msra.gmra.mrb[32].mxu0 %v1318_v15  ;;  %1915 = vmatmul.mubr.bf16.vlgmr.msra.gmra.mrb[32].mxu1 %v1318_v15  ;;  %s2196_s7 = scalar_lea.vmem %s1561_s5, 64  ;;  %p2201_p3 = scmp.lt.s32.totalorder %s1561_s5, %s1561_s5 }
 0x7a8   :  { %1950 = vmatprep.mubr.msk.f32.mxu0 %vm2230_vm0, %v2228_v0  ;;  %1955 = vmatpush3.bf16.msra.mxu0 %v1954_v19  ;;  %v1451_v0 = vld [vmem:[%s2826_s6 + $0x18] sm:$0xff]  ;;  %p2197_p2 = scmp.ne.s32.totalorder %s1561_s5, %s2196_s7  ;;  %p2202_p4 = scmp.lt.s32.totalorder %s2196_s7, %s2196_s7 }
 0x7a9   :  { %1956 = vmatprep.subr.bf16.mxu0 %v2232_v20  ;;  %v1957_v23 = vpack.c.bf16 %v1451_v0, %v1450_v21 }
 0x7aa   :  { %p2203_p5 = por %p2202_p4, %p2201_p3 }
 0x7ac   :  { %1958 = vmatpush3.bf16.msra.mxu0 %v1957_v23  ;;  %p2204_p6 = pnand %p2203_p5, %p2197_p2 }
 0x7ad   :  { %1959 = vmatprep.subr.bf16.mxu0 %v2232_v20 }
 0x7b0   :  { %1961 = vmatpush3.bf16.msra.mxu0 %v1960_v25 }
 0x7b1   :  { %1962 = vmatprep.subr.bf16.mxu0 %v2232_v20 }
 0x7b4   :  { %1964 = vmatpush3.bf16.msra.mxu0 %v1963_v43 }
 0x7b5   :  { %1965 = vmatprep.subr.bf16.mxu0 %v2232_v20 }
 0x7b8   :  { %1967 = vmatpush3.bf16.msra.mxu0 %v1966_v56 }
 0x7b9   :  { %1968 = vmatprep.subr.bf16.mxu0 %v2232_v20 }
 0x7bc   :  { %1970 = vmatpush3.bf16.msra.mxu0 %v1969_v1 }
 0x7bd   :  { %1971 = vmatprep.subr.bf16.mxu0 %v2232_v20 }
 0x7c0   :  { %1973 = vmatpush3.bf16.msra.mxu0 %v1972_v47 }
 0x7c1   :  { %1974 = vmatprep.subr.bf16.mxu0 %v2232_v20 }
 0x7c4   :  { %1976 = vmatpush3.bf16.msra.mxu0 %v1975_v44 }
 0x87a   :  { %v1354_v62 = vpop.f32.mrb[32].mxu0  ;;  %v1395_v48 = vpop.f32.mrb[32].mxu1 }
 0x87b   :  { %v1403_v60 = vrot.slane %v1354_v62, 1  ;;  %v1356_v3 = vpop.f32.mrb[33].mxu0  ;;  %v1916_v50 = vpop.f32.mrb[33].mxu1  ;;  %v1422_v38 = vrot.slane %v1395_v48, 1 }
 0x87c   :  { %v1404_v26 = vrot.slane %v1356_v3, 1  ;;  %v1358_v27 = vpop.f32.mrb[34].mxu0  ;;  %v1398_v29 = vpop.f32.mrb[34].mxu1 }
 0x87d   :  { %v1407_v30 = vadd.f32 %v1403_v60, %v2467_v11  ;;  %v1359_v32 = vpop.f32.mrb[35].mxu0  ;;  %v1917_v33 = vpop.f32.mrb[35].mxu1 }
 0x87e   :  { %v1408_v52 = vadd.f32 %v1404_v26, %v2459_v61 }
 0x87f   :  { %v1637_v34 = vmul.f32 -1.442695, %v1407_v30 }
 0x880   :  { %v1638_v35 = vmul.f32 -1.442695, %v1408_v52 }
 0x881   :  { %2121 = vpow2.f32 %v1637_v34 }
 0x882   :  { %2123 = vpow2.f32 %v1638_v35 }
 0x88b   :  { %v2122_v36 = vpop.eup %2121 }
 0x88c   :  { %v2124_v49 = vpop.eup %2123  ;;  %v1415_v54 = vadd.f32 1.0, %v2122_v36 }
 0x88d   :  { %v1416_v37 = vadd.f32 1.0, %v2124_v49 }
 0x88e   :  { %2125 = vrcp.f32 %v1415_v54 }
 0x88f   :  { %2127 = vrcp.f32 %v1416_v37 }
 0x898   :  { %v2126_v39 = vpop.eup %2125 }
 0x899   :  { %v2128_v42 = vpop.eup %2127  ;;  %v1424_v11 = vmul.f32 %v2126_v39, %v1422_v38 }
 0x89a   :  { %v1431_v45 = vmul.f32 %v2128_v42, %v1429_v41  ;;  %v1427_v61 = vsub.f32 1.0, %v2128_v42 }
 0x89b   :  { %v1425_v46 = vadd.f32 %v1424_v11, %v2462_v5 }
 0x89d   :  { %2129 = vtanh.f32 %v1425_v46 }
 0x8a7   :  { %v2130_v2 = vpop.eup %2129 }
 0x8a8   :  { %v1428_v4 = vmul.f32 %v2130_v2, %v1427_v61 }
 0x8aa   :  { %v1432_v7 = vadd.f32 %v1431_v45, %v1428_v4 }
 0x8ac   :  { %v1434_v8 = vrot.slane %v1432_v7, 7 }
 0x8ae   :  { %v1436_v10 = vadd.f32 %v1434_v8, %v2737_v16 }
 0x8b0   :  { %v1437_v14 = vmul.f32 0.125, %v1436_v10 }
 0x8b2   :  { %v1439_v15 = vmul.f32 %v1438_v13, %v1437_v14 }
 0x8b4   :  { %v1445_v5 = vrot.slane %v1439_v15, %v96_v9 }
 0x8b6   :  { %v1447_v17 = vmul.f32 %v1445_v5, %v1440_v12 }
 0x8b8   :  { %1951 = vmatmul.mubr.f32.vlgmr.msra.gmra.mrb[36].mxu0 %v1447_v17 }
 0x98b   :  { %v1537_v16 = vpop.f32.mrb[36].mxu0 }
 0x98c   :  { %v1538_v19 = vadd.f32 %v1639_v18, %v1537_v16  ;;  %v1952_v20 = vpop.f32.mrb[37].mxu0 }
 0x98e   :  { %v1542_v21 = vsel %vm1541_vm3, %v1538_v19, -inf }
 0x98f   :  { %1543 = vmax.xlane.f32.xlu0 %v1542_v21 }
 0xa1c   :  { %v1544_v0 = vpop.xlane.xlu0 %1543 }
 0xa1d   :  { %v1545_v23 = vsub.f32 %v1538_v19, %v1544_v0 }
 0xa1f   :  { %v1546_v22 = vmul.f32 1.442695, %v1545_v23 }
 0xa21   :  { %2131 = vpow2.f32 %v1546_v22 }
 0xa2b   :  { %v2132_v24 = vpop.eup %2131 }
 0xa2c   :  { %v1548_v55 = vsel %vm1541_vm3, %v2132_v24, 0.0 }
 0xa2d   :  { %1549 = vadd.xlane.f32.xlu0 %v1548_v55 }
 0xaba   :  { %v1550_v9 = vpop.xlane.xlu0 %1549 }
 0xabb   :  { %2133 = vrcp.f32 %v1550_v9 }
 0xac5   :  { %v2134_v25 = vpop.eup %2133 }
 0xac6   :  { %v1552_v28 = vmul.f32 %v2134_v25, %v2132_v24 }
 0xac8   :  { %1553 = vst.msk [vmem:[#allocation7] sm:$0xf] %vm1541_vm3, %v1552_v28 }
 0xac9   :  { %2207 = shalt.err (!%p2204_p6)
}
 0xaca   :  { %s2208_s22 = scalar_lea.hbm %s2828_s8, 64 }
 0xacb   :  { %p2209_p7 = scmp.ne.s32.totalorder %s2828_s8, %s2208_s22  ;;  %p2212_p8 = scmp.lt.u32.totalorder %s2208_s22, %s2828_s8 }
 0xacd   :  { %p2214_p9 = pnand %p2212_p8, %p2209_p7 }
 0xacf   :  { %2217 = shalt.err (!%p2214_p9)
}
 0xad0   :  { %1563 = dma.vmem_to_hbm [thread:$0]  %s1561_s5, 64, %s2828_s8, [#allocation4]  }
 0xad1   :  { %2222 = dma.done.wait [#allocation4], 64  }
 0xad2   :  { %2223 = vsyncadd [#allocation4], 4294967232 }
 0xad3   :  { %1567 = vsyncpa [#allocation3], 1 }
 0xad4   :  { %1568 = vsyncpa [#allocation6], 1 }
 0xad5   :  { %1569 = vsyncpa [#allocation4], 1 }

</bundles_post_ra>
